<compile_context>
chip_gen: v6e
topology: v6e:2x2x1
jax: 0.10.0
libtpu: 0.0.40
codegen_flags: <defaults>
</compile_context>

<pallas_src>
import functools

import jax
import jax.numpy as jnp
from jax import lax
from jax.experimental import pallas as pl
from jax.experimental.pallas import tpu as pltpu

# Small, module-consistent shapes.
INPUT_SIZE = 16
HIDDEN_SIZE = 32
LATENT_SIZE = 16
NUM_LAYERS = 2          # kernel specialized to 2 layers (module default)
SEQ_LEN = 8
BATCH = 2

_VMEM = pl.BlockSpec(memory_space=pltpu.MemorySpace.VMEM)

# Band gate order (i, f, o, g) -> PyTorch row-block index in its (i, f, g, o) layout.
# Column band layout of every (*, 8H) gate matrix: [i_f,i_b,f_f,f_b,o_f,o_b,g_f,g_b].
_GATE_ORDER = (0, 1, 3, 2)


# ----------------------------------------------------------------------------
# The fused kernel
# ----------------------------------------------------------------------------
def _bilstm_encoder_kernel(
    x_sel_ref,        # (T*B, 2*INPUT_SIZE)  row block s = [x[s] | x[T-1-s]]
    wih0_ref,         # (2*INPUT_SIZE, 8H)   block-diagonal per direction, f32
    whh0_ref,         # (2H, 8H)  block-structured recurrent weights, bf16
    b0_ref,           # (1, 8H)
    w1nat_ref,        # (2H, 8H)  layer-1 input weights vs natural-order states
    w1rev_ref,        # (2H, 8H)  layer-1 input weights vs reversed-order states
    whh1_ref,         # (2H, 8H)  bf16
    b1_ref,           # (1, 8H)
    h0cat_ref,        # (NUM_LAYERS, B, 2H)  [h_fwd | h_bwd] per layer
    c0cat_ref,        # (NUM_LAYERS, B, 2H)
    whead_ref,        # (2H, 2L)  [wmu | wsig]
    bhead_ref,        # (1, 2L)
    out_ref,          # (B, 2L)   [mu | softplus(sigma_pre)]
    hnat_scr,         # (T*B, 2H) scratch: layer-0 outputs, step order
    hrev_scr,         # (T*B, 2H) scratch: layer-0 outputs, reversed step order
    *, hidden_size, seq_len, latent_size):
  H = hidden_size
  T = seq_len
  L = latent_size
  B = h0cat_ref.shape[1]
  G = 8 * H

  # Hoisted activation masks: g bands (lanes >= 6H) use tanh, the rest sigmoid.
  lane = lax.broadcasted_iota(jnp.int32, (B, G), 1)
  is_g = lane >= 6 * H
  a_scale = jnp.where(is_g, 1.0, 0.5).astype(jnp.float32)
  a_shift = jnp.where(is_g, 0.0, 0.5).astype(jnp.float32)

  def run_layer(gx_sel, whh_bf, h_cat, c_cat, store):
    """Both directions of one layer, fully unrolled, pre-selected projections.

    h_cat / c_cat: (B, 2H) = [forward state | backward state].
    gx_sel row block s: fwd bands hold the time-s input projection, bwd bands
    hold the time-(T-1-s) input projection (selection baked into the layout).
    """
    for s in range(T):                                        # static -> unrolled
      gates = (gx_sel[s * B:(s + 1) * B, :]
               + jnp.dot(h_cat.astype(jnp.bfloat16), whh_bf,
                         preferred_element_type=jnp.float32))
      # Single EUP pass: sigmoid(x) = 0.5*(tanh(x/2)+1); tanh bands untouched.
      act = jnp.tanh(gates * a_scale) * a_scale + a_shift
      i_cat = act[:, 0:2 * H]                                 # [i_f | i_b]
      f_cat = act[:, 2 * H:4 * H]
      o_cat = act[:, 4 * H:6 * H]
      g_cat = act[:, 6 * H:8 * H]
      c_cat = f_cat * c_cat + i_cat * g_cat
      h_cat = o_cat * jnp.tanh(c_cat)
      if store:
        hnat_scr[pl.ds(s * B, B), :] = h_cat
        hrev_scr[pl.ds((T - 1 - s) * B, B), :] = h_cat
    return h_cat

  # ---------------- layer 0 ----------------
  # Projection kept in vregs; time-reversal select folded into x_sel / wih0.
  gx0 = (jnp.dot(x_sel_ref[...], wih0_ref[...],
                 preferred_element_type=jnp.float32) + b0_ref[...])
  run_layer(gx0, whh0_ref[...], h0cat_ref[0], c0cat_ref[0], store=True)

  # ---------------- layer 1 ----------------
  # Already-selected projection from natural + reversed layer-0 outputs.
  gx1 = (jnp.dot(hnat_scr[...], w1nat_ref[...], preferred_element_type=jnp.float32)
         + jnp.dot(hrev_scr[...], w1rev_ref[...], preferred_element_type=jnp.float32)
         + b1_ref[...])
  h_cat = run_layer(gx1, whh1_ref[...], h0cat_ref[1], c0cat_ref[1], store=False)

  # ---------------- heads ----------------
  # Reproduce PyTorch's h_n.view(num_layers, 2, B, -1)[-1].view(B, -1) quirk.
  h_f = h_cat[:, 0:H]
  h_b = h_cat[:, H:2 * H]
  chunks = ([h_f[r:r + 1, :] for r in range(B)]
            + [h_b[r:r + 1, :] for r in range(B)])
  h_last = jnp.concatenate(
      [jnp.concatenate([chunks[2 * r], chunks[2 * r + 1]], axis=1)
       for r in range(B)], axis=0)                            # (B, 2H)

  head = (jnp.dot(h_last, whead_ref[...],
                  preferred_element_type=jnp.float32) + bhead_ref[...])
  # Softplus (beta=1, threshold=20) on the sigma half only.
  sp = jnp.where(head > 20.0, head,
                 jnp.log1p(jnp.exp(jnp.minimum(head, 20.0))))
  lane2 = lax.broadcasted_iota(jnp.int32, (B, 2 * L), 1)
  out_ref[...] = jnp.where(lane2 >= L, sp, head)


# ----------------------------------------------------------------------------
# Wrapper
# ----------------------------------------------------------------------------
def bilstm_encoder_forward(params, x, h0, c0):
  """x: (T, B, INPUT_SIZE); h0/c0: (2*NUM_LAYERS, B, H) -> (mu, sigma), each (B, L)."""
  T, B, D = x.shape
  H = HIDDEN_SIZE
  L = LATENT_SIZE
  # Host-side (XLA) prep: bake the fwd/bwd time selection into the input layout
  # and pre-concatenate the per-direction initial states along lanes.
  x_sel = jnp.concatenate([x, x[::-1]], axis=-1).reshape(T * B, 2 * D)
  h0cat = jnp.concatenate([h0[0::2], h0[1::2]], axis=-1)      # (num_layers, B, 2H)
  c0cat = jnp.concatenate([c0[0::2], c0[1::2]], axis=-1)

  kernel = functools.partial(_bilstm_encoder_kernel, hidden_size=H, seq_len=T,
                             latent_size=L)
  out = pl.pallas_call(
      kernel,
      out_shape=jax.ShapeDtypeStruct((B, 2 * L), jnp.float32),
      in_specs=[_VMEM] * 12,
      out_specs=_VMEM,
      scratch_shapes=[
          pltpu.VMEM((T * B, 2 * H), jnp.float32),   # layer-0 outputs, natural order
          pltpu.VMEM((T * B, 2 * H), jnp.float32),   # layer-0 outputs, reversed order
      ],
  )(x_sel,
    params["wih0"], params["whh0"], params["b0"],
    params["w1nat"], params["w1rev"], params["whh1"], params["b1"],
    h0cat, c0cat, params["whead"], params["bhead"])
  return out[:, :L], out[:, L:]


# ----------------------------------------------------------------------------
# Parameter init (PyTorch layout) + packing into the kernel's band layout
# ----------------------------------------------------------------------------
def init_raw_params(key):
  H = HIDDEN_SIZE
  kH = 1.0 / float(H) ** 0.5
  keys = iter(jax.random.split(key, NUM_LAYERS * 2 * 4 + 4))
  raw_lstm = []
  for layer in range(NUM_LAYERS):
    d_in = INPUT_SIZE if layer == 0 else 2 * H
    for _direction in range(2):
      raw_lstm.append({
          "w_ih": jax.random.uniform(next(keys), (4 * H, d_in), jnp.float32, -kH, kH),
          "w_hh": jax.random.uniform(next(keys), (4 * H, H), jnp.float32, -kH, kH),
          "b_ih": jax.random.uniform(next(keys), (4 * H,), jnp.float32, -kH, kH),
          "b_hh": jax.random.uniform(next(keys), (4 * H,), jnp.float32, -kH, kH),
      })
  kL = 1.0 / float(2 * H) ** 0.5
  raw_mu = {"w": jax.random.uniform(next(keys), (LATENT_SIZE, 2 * H), jnp.float32, -kL, kL),
            "b": jax.random.uniform(next(keys), (LATENT_SIZE,), jnp.float32, -kL, kL)}
  raw_sigma = {"w": jax.random.uniform(next(keys), (LATENT_SIZE, 2 * H), jnp.float32, -kL, kL),
               "b": jax.random.uniform(next(keys), (LATENT_SIZE,), jnp.float32, -kL, kL)}
  return raw_lstm, raw_mu, raw_sigma


def _pack_layer0(raw_f, raw_b):
  """Layer 0: block-diagonal input weights (for x_sel) + bf16 recurrent weights."""
  H, D = HIDDEN_SIZE, INPUT_SIZE
  raws = (raw_f, raw_b)
  zd = jnp.zeros((D, H), jnp.float32)
  zh = jnp.zeros((H, H), jnp.float32)
  wih_bands, whh_bands, b_bands = [], [], []
  for p in _GATE_ORDER:                 # band gate order (i, f, o, g)
    for d in range(2):                  # ... x (fwd, bwd)
      r = raws[d]
      blk = slice(p * H, (p + 1) * H)
      wi = r["w_ih"][blk, :].T                                   # (D, H)
      wih_bands.append(jnp.concatenate([wi, zd] if d == 0 else [zd, wi], axis=0))
      wh = r["w_hh"][blk, :].T                                   # (H, H)
      whh_bands.append(jnp.concatenate([wh, zh] if d == 0 else [zh, wh], axis=0))
      b_bands.append(r["b_ih"][blk] + r["b_hh"][blk])
  wih0 = jnp.concatenate(wih_bands, axis=1)                      # (2D, 8H) f32
  whh0 = jnp.concatenate(whh_bands, axis=1).astype(jnp.bfloat16)  # (2H, 8H) bf16
  b0 = jnp.concatenate(b_bands).reshape(1, 8 * H)
  return wih0, whh0, b0


def _pack_layer1(raw_f, raw_b):
  """Layer 1: natural/reversed-order input weights + bf16 recurrent weights."""
  H = HIDDEN_SIZE
  z = jnp.zeros((H, H), jnp.float32)
  nat_bands, rev_bands, whh_bands, b_bands = [], [], [], []
  for p in _GATE_ORDER:
    blk = slice(p * H, (p + 1) * H)
    wf = raw_f["w_ih"][blk, :]          # (H, 2H): [:, :H] <- fwd outs, [:, H:] <- bwd outs
    wb = raw_b["w_ih"][blk, :]
    # forward-direction band
    nat_bands.append(jnp.concatenate([wf[:, :H].T, z], axis=0))
    rev_bands.append(jnp.concatenate([z, wf[:, H:].T], axis=0))
    whh_bands.append(jnp.concatenate([raw_f["w_hh"][blk, :].T, z], axis=0))
    b_bands.append(raw_f["b_ih"][blk] + raw_f["b_hh"][blk])
    # backward-direction band
    nat_bands.append(jnp.concatenate([z, wb[:, H:].T], axis=0))
    rev_bands.append(jnp.concatenate([wb[:, :H].T, z], axis=0))
    whh_bands.append(jnp.concatenate([z, raw_b["w_hh"][blk, :].T], axis=0))
    b_bands.append(raw_b["b_ih"][blk] + raw_b["b_hh"][blk])
  w1nat = jnp.concatenate(nat_bands, axis=1)                     # (2H, 8H) f32
  w1rev = jnp.concatenate(rev_bands, axis=1)                     # (2H, 8H) f32
  whh1 = jnp.concatenate(whh_bands, axis=1).astype(jnp.bfloat16)  # (2H, 8H) bf16
  b1 = jnp.concatenate(b_bands).reshape(1, 8 * H)
  return w1nat, w1rev, whh1, b1


def pack_params(raw_lstm, raw_mu, raw_sigma):
  wih0, whh0, b0 = _pack_layer0(raw_lstm[0], raw_lstm[1])
  w1nat, w1rev, whh1, b1 = _pack_layer1(raw_lstm[2], raw_lstm[3])
  whead = jnp.concatenate([raw_mu["w"].T, raw_sigma["w"].T], axis=1)   # (2H, 2L)
  bhead = jnp.concatenate([raw_mu["b"], raw_sigma["b"]]).reshape(1, 2 * LATENT_SIZE)
  return {
      "wih0": wih0, "whh0": whh0, "b0": b0,
      "w1nat": w1nat, "w1rev": w1rev, "whh1": whh1, "b1": b1,
      "whead": whead, "bhead": bhead,
  }


# ----------------------------------------------------------------------------
# Pure-JAX reference (mirrors the PyTorch module exactly) for self-checking
# ----------------------------------------------------------------------------
def _reference_forward(raw_lstm, raw_mu, raw_sigma, x, h0, c0):
  P = jax.lax.Precision.HIGHEST
  T, B, _ = x.shape
  H = HIDDEN_SIZE
  layer_in = x
  h_finals = []
  for layer in range(NUM_LAYERS):
    outs = []
    for d in range(2):
      idx = 2 * layer + d
      p = raw_lstm[idx]
      seq = layer_in if d == 0 else layer_in[::-1]
      h, c = h0[idx], c0[idx]
      hs = []
      for t in range(T):
        gates = (jnp.dot(seq[t], p["w_ih"].T, precision=P)
                 + jnp.dot(h, p["w_hh"].T, precision=P)
                 + p["b_ih"] + p["b_hh"])
        i = jax.nn.sigmoid(gates[:, 0:H])
        f = jax.nn.sigmoid(gates[:, H:2 * H])
        g = jnp.tanh(gates[:, 2 * H:3 * H])
        o = jax.nn.sigmoid(gates[:, 3 * H:4 * H])
        c = f * c + i * g
        h = o * jnp.tanh(c)
        hs.append(h)
      out = jnp.stack(hs)
      if d == 1:
        out = out[::-1]
      outs.append(out)
      h_finals.append(h)
    layer_in = jnp.concatenate(outs, axis=-1)
  h_n = jnp.stack(h_finals)                                   # (2*num_layers, B, H)
  h_last = h_n.reshape(NUM_LAYERS, 2, B, H)[-1].reshape(B, 2 * H)
  mu = jnp.dot(h_last, raw_mu["w"].T, precision=P) + raw_mu["b"]
  s = jnp.dot(h_last, raw_sigma["w"].T, precision=P) + raw_sigma["b"]
  sigma = jnp.where(s > 20.0, s, jnp.log1p(jnp.exp(jnp.minimum(s, 20.0))))
  return mu, sigma


if __name__ == "__main__":
  key = jax.random.PRNGKey(0)
  k_param, k_x, k_h, k_c = jax.random.split(key, 4)

  raw_lstm, raw_mu, raw_sigma = init_raw_params(k_param)
  params = pack_params(raw_lstm, raw_mu, raw_sigma)

  x = jax.random.normal(k_x, (SEQ_LEN, BATCH, INPUT_SIZE), jnp.float32)
  h0 = 0.1 * jax.random.normal(k_h, (NUM_LAYERS * 2, BATCH, HIDDEN_SIZE), jnp.float32)
  c0 = 0.1 * jax.random.normal(k_c, (NUM_LAYERS * 2, BATCH, HIDDEN_SIZE), jnp.float32)

  fwd = jax.jit(bilstm_encoder_forward)
  mu, sigma = fwd(params, x, h0, c0)
  jax.block_until_ready((mu, sigma))

  mu_ref, sigma_ref = _reference_forward(raw_lstm, raw_mu, raw_sigma, x, h0, c0)

  assert mu.shape == (BATCH, LATENT_SIZE)
  assert sigma.shape == (BATCH, LATENT_SIZE)
  assert bool(jnp.all(sigma > 0.0))
  assert bool(jnp.allclose(mu, mu_ref, atol=1e-2, rtol=1e-2)), (
      f"mu mismatch: {jnp.max(jnp.abs(mu - mu_ref))}")
  assert bool(jnp.allclose(sigma, sigma_ref, atol=1e-2, rtol=1e-2)), (
      f"sigma mismatch: {jnp.max(jnp.abs(sigma - sigma_ref))}")
  print("KERNEL_OK")
</pallas_src>

<mosaic_0001>
module attributes {stable_mosaic.version = 11 : i64} {
  func.func @_bilstm_encoder_kernel(%arg0: memref<16x32xf32, #tpu.memory_space<vmem>>, %arg1: memref<32x256xf32, #tpu.memory_space<vmem>>, %arg2: memref<64x256xbf16, #tpu.memory_space<vmem>>, %arg3: memref<1x256xf32, #tpu.memory_space<vmem>>, %arg4: memref<64x256xf32, #tpu.memory_space<vmem>>, %arg5: memref<64x256xf32, #tpu.memory_space<vmem>>, %arg6: memref<64x256xbf16, #tpu.memory_space<vmem>>, %arg7: memref<1x256xf32, #tpu.memory_space<vmem>>, %arg8: memref<2x2x64xf32, #tpu.memory_space<vmem>>, %arg9: memref<2x2x64xf32, #tpu.memory_space<vmem>>, %arg10: memref<64x32xf32, #tpu.memory_space<vmem>>, %arg11: memref<1x32xf32, #tpu.memory_space<vmem>>, %arg12: memref<2x32xf32, #tpu.memory_space<vmem>>, %arg13: memref<16x64xf32, #tpu.memory_space<vmem>>, %arg14: memref<16x64xf32, #tpu.memory_space<vmem>>) attributes {dimension_semantics = [], scalar_prefetch = 0 : i64, scratch_operands = 2 : i64, tpu.core_type = #tpu.core_type<tc>} {
    %0 = tpu.iota {dimensions = array<i32: 1>} : vector<2x256xi32>
    %c192_i32 = arith.constant 192 : i32
    %1 = vector.broadcast %c192_i32 : i32 to vector<2x256xi32>
    %2 = arith.cmpi sge, %0, %1 : vector<2x256xi32>
    %cst = arith.constant 1.000000e+00 : f32
    %cst_0 = arith.constant 5.000000e-01 : f32
    %3 = vector.broadcast %cst : f32 to vector<2x256xf32>
    %4 = vector.broadcast %cst_0 : f32 to vector<2x256xf32>
    %5 = arith.select %2, %3, %4 : vector<2x256xi1>, vector<2x256xf32>
    %cst_1 = arith.constant 0.000000e+00 : f32
    %cst_2 = arith.constant 5.000000e-01 : f32
    %6 = vector.broadcast %cst_1 : f32 to vector<2x256xf32>
    %7 = vector.broadcast %cst_2 : f32 to vector<2x256xf32>
    %8 = arith.select %2, %6, %7 : vector<2x256xi1>, vector<2x256xf32>
    %c0 = arith.constant 0 : index
    %c0_3 = arith.constant 0 : index
    %9 = vector.load %arg0[%c0, %c0_3] : memref<16x32xf32, #tpu.memory_space<vmem>>, vector<16x32xf32>
    %c0_4 = arith.constant 0 : index
    %c0_5 = arith.constant 0 : index
    %10 = vector.load %arg1[%c0_4, %c0_5] : memref<32x256xf32, #tpu.memory_space<vmem>>, vector<32x256xf32>
    %cst_6 = arith.constant dense<0.000000e+00> : vector<16x256xf32>
    %11 = tpu.matmul %9, %10, %cst_6 {dimension_numbers = #tpu.dot_dimension_numbers<[1], [0], [0], [1], [0, 0, 1, 1], [], []>} : vector<16x32xf32>, vector<32x256xf32>, vector<16x256xf32> -> vector<16x256xf32>
    %c0_7 = arith.constant 0 : index
    %c0_8 = arith.constant 0 : index
    %12 = vector.load %arg3[%c0_7, %c0_8] : memref<1x256xf32, #tpu.memory_space<vmem>>, vector<1x256xf32>
    %13 = vector.broadcast %12 : vector<1x256xf32> to vector<16x256xf32>
    %14 = arith.addf %11, %13 : vector<16x256xf32>
    %c0_9 = arith.constant 0 : index
    %c0_10 = arith.constant 0 : index
    %15 = vector.load %arg2[%c0_9, %c0_10] : memref<64x256xbf16, #tpu.memory_space<vmem>>, vector<64x256xbf16>
    %c0_11 = arith.constant 0 : index
    %c0_12 = arith.constant 0 : index
    %c0_13 = arith.constant 0 : index
    %16 = vector.load %arg8[%c0_11, %c0_12, %c0_13] : memref<2x2x64xf32, #tpu.memory_space<vmem>>, vector<1x2x64xf32>
    %17 = vector.shape_cast %16 : vector<1x2x64xf32> to vector<2x64xf32>
    %c0_14 = arith.constant 0 : index
    %c0_15 = arith.constant 0 : index
    %c0_16 = arith.constant 0 : index
    %18 = vector.load %arg9[%c0_14, %c0_15, %c0_16] : memref<2x2x64xf32, #tpu.memory_space<vmem>>, vector<1x2x64xf32>
    %19 = vector.shape_cast %18 : vector<1x2x64xf32> to vector<2x64xf32>
    %20 = vector.extract_strided_slice %14 {offsets = [0, 0], sizes = [2, 256], strides = [1, 1]} : vector<16x256xf32> to vector<2x256xf32>
    %21 = arith.truncf %17 : vector<2x64xf32> to vector<2x64xbf16>
    %cst_17 = arith.constant dense<0.000000e+00> : vector<2x256xf32>
    %22 = tpu.matmul %21, %15, %cst_17 {dimension_numbers = #tpu.dot_dimension_numbers<[1], [0], [0], [1], [0, 0, 1, 1], [], []>} : vector<2x64xbf16>, vector<64x256xbf16>, vector<2x256xf32> -> vector<2x256xf32>
    %23 = arith.addf %20, %22 : vector<2x256xf32>
    %24 = arith.mulf %23, %5 : vector<2x256xf32>
    %25 = math.tanh %24 : vector<2x256xf32>
    %26 = arith.mulf %25, %5 : vector<2x256xf32>
    %27 = arith.addf %26, %8 : vector<2x256xf32>
    %28 = vector.extract_strided_slice %27 {offsets = [0, 0], sizes = [2, 64], strides = [1, 1]} : vector<2x256xf32> to vector<2x64xf32>
    %29 = vector.extract_strided_slice %27 {offsets = [0, 64], sizes = [2, 64], strides = [1, 1]} : vector<2x256xf32> to vector<2x64xf32>
    %30 = vector.extract_strided_slice %27 {offsets = [0, 128], sizes = [2, 64], strides = [1, 1]} : vector<2x256xf32> to vector<2x64xf32>
    %31 = vector.extract_strided_slice %27 {offsets = [0, 192], sizes = [2, 64], strides = [1, 1]} : vector<2x256xf32> to vector<2x64xf32>
    %32 = arith.mulf %29, %19 : vector<2x64xf32>
    %33 = arith.mulf %28, %31 : vector<2x64xf32>
    %34 = arith.addf %32, %33 : vector<2x64xf32>
    %35 = math.tanh %34 : vector<2x64xf32>
    %36 = arith.mulf %30, %35 : vector<2x64xf32>
    %c0_18 = arith.constant 0 : index
    %c0_19 = arith.constant 0 : index
    %37 = vector.load %arg13[%c0_18, %c0_19] : memref<16x64xf32, #tpu.memory_space<vmem>>, vector<2x64xf32>
    tpu.vector_store %arg13[%c0_18, %c0_19], %36 {strides = array<i32>} : memref<16x64xf32, #tpu.memory_space<vmem>>, vector<2x64xf32>,
    %c14 = arith.constant 14 : index
    %c0_20 = arith.constant 0 : index
    %38 = vector.load %arg14[%c14, %c0_20] : memref<16x64xf32, #tpu.memory_space<vmem>>, vector<2x64xf32>
    tpu.vector_store %arg14[%c14, %c0_20], %36 {strides = array<i32>} : memref<16x64xf32, #tpu.memory_space<vmem>>, vector<2x64xf32>,
    %39 = vector.extract_strided_slice %14 {offsets = [2, 0], sizes = [2, 256], strides = [1, 1]} : vector<16x256xf32> to vector<2x256xf32>
    %40 = arith.truncf %36 : vector<2x64xf32> to vector<2x64xbf16>
    %cst_21 = arith.constant dense<0.000000e+00> : vector<2x256xf32>
    %41 = tpu.matmul %40, %15, %cst_21 {dimension_numbers = #tpu.dot_dimension_numbers<[1], [0], [0], [1], [0, 0, 1, 1], [], []>} : vector<2x64xbf16>, vector<64x256xbf16>, vector<2x256xf32> -> vector<2x256xf32>
    %42 = arith.addf %39, %41 : vector<2x256xf32>
    %43 = arith.mulf %42, %5 : vector<2x256xf32>
    %44 = math.tanh %43 : vector<2x256xf32>
    %45 = arith.mulf %44, %5 : vector<2x256xf32>
    %46 = arith.addf %45, %8 : vector<2x256xf32>
    %47 = vector.extract_strided_slice %46 {offsets = [0, 0], sizes = [2, 64], strides = [1, 1]} : vector<2x256xf32> to vector<2x64xf32>
    %48 = vector.extract_strided_slice %46 {offsets = [0, 64], sizes = [2, 64], strides = [1, 1]} : vector<2x256xf32> to vector<2x64xf32>
    %49 = vector.extract_strided_slice %46 {offsets = [0, 128], sizes = [2, 64], strides = [1, 1]} : vector<2x256xf32> to vector<2x64xf32>
    %50 = vector.extract_strided_slice %46 {offsets = [0, 192], sizes = [2, 64], strides = [1, 1]} : vector<2x256xf32> to vector<2x64xf32>
    %51 = arith.mulf %48, %34 : vector<2x64xf32>
    %52 = arith.mulf %47, %50 : vector<2x64xf32>
    %53 = arith.addf %51, %52 : vector<2x64xf32>
    %54 = math.tanh %53 : vector<2x64xf32>
    %55 = arith.mulf %49, %54 : vector<2x64xf32>
    %c2 = arith.constant 2 : index
    %c0_22 = arith.constant 0 : index
    %56 = vector.load %arg13[%c2, %c0_22] : memref<16x64xf32, #tpu.memory_space<vmem>>, vector<2x64xf32>
    tpu.vector_store %arg13[%c2, %c0_22], %55 {strides = array<i32>} : memref<16x64xf32, #tpu.memory_space<vmem>>, vector<2x64xf32>,
    %c12 = arith.constant 12 : index
    %c0_23 = arith.constant 0 : index
    %57 = vector.load %arg14[%c12, %c0_23] : memref<16x64xf32, #tpu.memory_space<vmem>>, vector<2x64xf32>
    tpu.vector_store %arg14[%c12, %c0_23], %55 {strides = array<i32>} : memref<16x64xf32, #tpu.memory_space<vmem>>, vector<2x64xf32>,
    %58 = vector.extract_strided_slice %14 {offsets = [4, 0], sizes = [2, 256], strides = [1, 1]} : vector<16x256xf32> to vector<2x256xf32>
    %59 = arith.truncf %55 : vector<2x64xf32> to vector<2x64xbf16>
    %cst_24 = arith.constant dense<0.000000e+00> : vector<2x256xf32>
    %60 = tpu.matmul %59, %15, %cst_24 {dimension_numbers = #tpu.dot_dimension_numbers<[1], [0], [0], [1], [0, 0, 1, 1], [], []>} : vector<2x64xbf16>, vector<64x256xbf16>, vector<2x256xf32> -> vector<2x256xf32>
    %61 = arith.addf %58, %60 : vector<2x256xf32>
    %62 = arith.mulf %61, %5 : vector<2x256xf32>
    %63 = math.tanh %62 : vector<2x256xf32>
    %64 = arith.mulf %63, %5 : vector<2x256xf32>
    %65 = arith.addf %64, %8 : vector<2x256xf32>
    %66 = vector.extract_strided_slice %65 {offsets = [0, 0], sizes = [2, 64], strides = [1, 1]} : vector<2x256xf32> to vector<2x64xf32>
    %67 = vector.extract_strided_slice %65 {offsets = [0, 64], sizes = [2, 64], strides = [1, 1]} : vector<2x256xf32> to vector<2x64xf32>
    %68 = vector.extract_strided_slice %65 {offsets = [0, 128], sizes = [2, 64], strides = [1, 1]} : vector<2x256xf32> to vector<2x64xf32>
    %69 = vector.extract_strided_slice %65 {offsets = [0, 192], sizes = [2, 64], strides = [1, 1]} : vector<2x256xf32> to vector<2x64xf32>
    %70 = arith.mulf %67, %53 : vector<2x64xf32>
    %71 = arith.mulf %66, %69 : vector<2x64xf32>
    %72 = arith.addf %70, %71 : vector<2x64xf32>
    %73 = math.tanh %72 : vector<2x64xf32>
    %74 = arith.mulf %68, %73 : vector<2x64xf32>
    %c4 = arith.constant 4 : index
    %c0_25 = arith.constant 0 : index
    %75 = vector.load %arg13[%c4, %c0_25] : memref<16x64xf32, #tpu.memory_space<vmem>>, vector<2x64xf32>
    tpu.vector_store %arg13[%c4, %c0_25], %74 {strides = array<i32>} : memref<16x64xf32, #tpu.memory_space<vmem>>, vector<2x64xf32>,
    %c10 = arith.constant 10 : index
    %c0_26 = arith.constant 0 : index
    %76 = vector.load %arg14[%c10, %c0_26] : memref<16x64xf32, #tpu.memory_space<vmem>>, vector<2x64xf32>
    tpu.vector_store %arg14[%c10, %c0_26], %74 {strides = array<i32>} : memref<16x64xf32, #tpu.memory_space<vmem>>, vector<2x64xf32>,
    %77 = vector.extract_strided_slice %14 {offsets = [6, 0], sizes = [2, 256], strides = [1, 1]} : vector<16x256xf32> to vector<2x256xf32>
    %78 = arith.truncf %74 : vector<2x64xf32> to vector<2x64xbf16>
    %cst_27 = arith.constant dense<0.000000e+00> : vector<2x256xf32>
    %79 = tpu.matmul %78, %15, %cst_27 {dimension_numbers = #tpu.dot_dimension_numbers<[1], [0], [0], [1], [0, 0, 1, 1], [], []>} : vector<2x64xbf16>, vector<64x256xbf16>, vector<2x256xf32> -> vector<2x256xf32>
    %80 = arith.addf %77, %79 : vector<2x256xf32>
    %81 = arith.mulf %80, %5 : vector<2x256xf32>
    %82 = math.tanh %81 : vector<2x256xf32>
    %83 = arith.mulf %82, %5 : vector<2x256xf32>
    %84 = arith.addf %83, %8 : vector<2x256xf32>
    %85 = vector.extract_strided_slice %84 {offsets = [0, 0], sizes = [2, 64], strides = [1, 1]} : vector<2x256xf32> to vector<2x64xf32>
    %86 = vector.extract_strided_slice %84 {offsets = [0, 64], sizes = [2, 64], strides = [1, 1]} : vector<2x256xf32> to vector<2x64xf32>
    %87 = vector.extract_strided_slice %84 {offsets = [0, 128], sizes = [2, 64], strides = [1, 1]} : vector<2x256xf32> to vector<2x64xf32>
    %88 = vector.extract_strided_slice %84 {offsets = [0, 192], sizes = [2, 64], strides = [1, 1]} : vector<2x256xf32> to vector<2x64xf32>
    %89 = arith.mulf %86, %72 : vector<2x64xf32>
    %90 = arith.mulf %85, %88 : vector<2x64xf32>
    %91 = arith.addf %89, %90 : vector<2x64xf32>
    %92 = math.tanh %91 : vector<2x64xf32>
    %93 = arith.mulf %87, %92 : vector<2x64xf32>
    %c6 = arith.constant 6 : index
    %c0_28 = arith.constant 0 : index
    %94 = vector.load %arg13[%c6, %c0_28] : memref<16x64xf32, #tpu.memory_space<vmem>>, vector<2x64xf32>
    tpu.vector_store %arg13[%c6, %c0_28], %93 {strides = array<i32>} : memref<16x64xf32, #tpu.memory_space<vmem>>, vector<2x64xf32>,
    %c8 = arith.constant 8 : index
    %c0_29 = arith.constant 0 : index
    %95 = vector.load %arg14[%c8, %c0_29] : memref<16x64xf32, #tpu.memory_space<vmem>>, vector<2x64xf32>
    tpu.vector_store %arg14[%c8, %c0_29], %93 {strides = array<i32>} : memref<16x64xf32, #tpu.memory_space<vmem>>, vector<2x64xf32>,
    %96 = vector.extract_strided_slice %14 {offsets = [8, 0], sizes = [2, 256], strides = [1, 1]} : vector<16x256xf32> to vector<2x256xf32>
    %97 = arith.truncf %93 : vector<2x64xf32> to vector<2x64xbf16>
    %cst_30 = arith.constant dense<0.000000e+00> : vector<2x256xf32>
    %98 = tpu.matmul %97, %15, %cst_30 {dimension_numbers = #tpu.dot_dimension_numbers<[1], [0], [0], [1], [0, 0, 1, 1], [], []>} : vector<2x64xbf16>, vector<64x256xbf16>, vector<2x256xf32> -> vector<2x256xf32>
    %99 = arith.addf %96, %98 : vector<2x256xf32>
    %100 = arith.mulf %99, %5 : vector<2x256xf32>
    %101 = math.tanh %100 : vector<2x256xf32>
    %102 = arith.mulf %101, %5 : vector<2x256xf32>
    %103 = arith.addf %102, %8 : vector<2x256xf32>
    %104 = vector.extract_strided_slice %103 {offsets = [0, 0], sizes = [2, 64], strides = [1, 1]} : vector<2x256xf32> to vector<2x64xf32>
    %105 = vector.extract_strided_slice %103 {offsets = [0, 64], sizes = [2, 64], strides = [1, 1]} : vector<2x256xf32> to vector<2x64xf32>
    %106 = vector.extract_strided_slice %103 {offsets = [0, 128], sizes = [2, 64], strides = [1, 1]} : vector<2x256xf32> to vector<2x64xf32>
    %107 = vector.extract_strided_slice %103 {offsets = [0, 192], sizes = [2, 64], strides = [1, 1]} : vector<2x256xf32> to vector<2x64xf32>
    %108 = arith.mulf %105, %91 : vector<2x64xf32>
    %109 = arith.mulf %104, %107 : vector<2x64xf32>
    %110 = arith.addf %108, %109 : vector<2x64xf32>
    %111 = math.tanh %110 : vector<2x64xf32>
    %112 = arith.mulf %106, %111 : vector<2x64xf32>
    %c8_31 = arith.constant 8 : index
    %c0_32 = arith.constant 0 : index
    %113 = vector.load %arg13[%c8_31, %c0_32] : memref<16x64xf32, #tpu.memory_space<vmem>>, vector<2x64xf32>
    tpu.vector_store %arg13[%c8_31, %c0_32], %112 {strides = array<i32>} : memref<16x64xf32, #tpu.memory_space<vmem>>, vector<2x64xf32>,
    %c6_33 = arith.constant 6 : index
    %c0_34 = arith.constant 0 : index
    %114 = vector.load %arg14[%c6_33, %c0_34] : memref<16x64xf32, #tpu.memory_space<vmem>>, vector<2x64xf32>
    tpu.vector_store %arg14[%c6_33, %c0_34], %112 {strides = array<i32>} : memref<16x64xf32, #tpu.memory_space<vmem>>, vector<2x64xf32>,
    %115 = vector.extract_strided_slice %14 {offsets = [10, 0], sizes = [2, 256], strides = [1, 1]} : vector<16x256xf32> to vector<2x256xf32>
    %116 = arith.truncf %112 : vector<2x64xf32> to vector<2x64xbf16>
    %cst_35 = arith.constant dense<0.000000e+00> : vector<2x256xf32>
    %117 = tpu.matmul %116, %15, %cst_35 {dimension_numbers = #tpu.dot_dimension_numbers<[1], [0], [0], [1], [0, 0, 1, 1], [], []>} : vector<2x64xbf16>, vector<64x256xbf16>, vector<2x256xf32> -> vector<2x256xf32>
    %118 = arith.addf %115, %117 : vector<2x256xf32>
    %119 = arith.mulf %118, %5 : vector<2x256xf32>
    %120 = math.tanh %119 : vector<2x256xf32>
    %121 = arith.mulf %120, %5 : vector<2x256xf32>
    %122 = arith.addf %121, %8 : vector<2x256xf32>
    %123 = vector.extract_strided_slice %122 {offsets = [0, 0], sizes = [2, 64], strides = [1, 1]} : vector<2x256xf32> to vector<2x64xf32>
    %124 = vector.extract_strided_slice %122 {offsets = [0, 64], sizes = [2, 64], strides = [1, 1]} : vector<2x256xf32> to vector<2x64xf32>
    %125 = vector.extract_strided_slice %122 {offsets = [0, 128], sizes = [2, 64], strides = [1, 1]} : vector<2x256xf32> to vector<2x64xf32>
    %126 = vector.extract_strided_slice %122 {offsets = [0, 192], sizes = [2, 64], strides = [1, 1]} : vector<2x256xf32> to vector<2x64xf32>
    %127 = arith.mulf %124, %110 : vector<2x64xf32>
    %128 = arith.mulf %123, %126 : vector<2x64xf32>
    %129 = arith.addf %127, %128 : vector<2x64xf32>
    %130 = math.tanh %129 : vector<2x64xf32>
    %131 = arith.mulf %125, %130 : vector<2x64xf32>
    %c10_36 = arith.constant 10 : index
    %c0_37 = arith.constant 0 : index
    %132 = vector.load %arg13[%c10_36, %c0_37] : memref<16x64xf32, #tpu.memory_space<vmem>>, vector<2x64xf32>
    tpu.vector_store %arg13[%c10_36, %c0_37], %131 {strides = array<i32>} : memref<16x64xf32, #tpu.memory_space<vmem>>, vector<2x64xf32>,
    %c4_38 = arith.constant 4 : index
    %c0_39 = arith.constant 0 : index
    %133 = vector.load %arg14[%c4_38, %c0_39] : memref<16x64xf32, #tpu.memory_space<vmem>>, vector<2x64xf32>
    tpu.vector_store %arg14[%c4_38, %c0_39], %131 {strides = array<i32>} : memref<16x64xf32, #tpu.memory_space<vmem>>, vector<2x64xf32>,
    %134 = vector.extract_strided_slice %14 {offsets = [12, 0], sizes = [2, 256], strides = [1, 1]} : vector<16x256xf32> to vector<2x256xf32>
    %135 = arith.truncf %131 : vector<2x64xf32> to vector<2x64xbf16>
    %cst_40 = arith.constant dense<0.000000e+00> : vector<2x256xf32>
    %136 = tpu.matmul %135, %15, %cst_40 {dimension_numbers = #tpu.dot_dimension_numbers<[1], [0], [0], [1], [0, 0, 1, 1], [], []>} : vector<2x64xbf16>, vector<64x256xbf16>, vector<2x256xf32> -> vector<2x256xf32>
    %137 = arith.addf %134, %136 : vector<2x256xf32>
    %138 = arith.mulf %137, %5 : vector<2x256xf32>
    %139 = math.tanh %138 : vector<2x256xf32>
    %140 = arith.mulf %139, %5 : vector<2x256xf32>
    %141 = arith.addf %140, %8 : vector<2x256xf32>
    %142 = vector.extract_strided_slice %141 {offsets = [0, 0], sizes = [2, 64], strides = [1, 1]} : vector<2x256xf32> to vector<2x64xf32>
    %143 = vector.extract_strided_slice %141 {offsets = [0, 64], sizes = [2, 64], strides = [1, 1]} : vector<2x256xf32> to vector<2x64xf32>
    %144 = vector.extract_strided_slice %141 {offsets = [0, 128], sizes = [2, 64], strides = [1, 1]} : vector<2x256xf32> to vector<2x64xf32>
    %145 = vector.extract_strided_slice %141 {offsets = [0, 192], sizes = [2, 64], strides = [1, 1]} : vector<2x256xf32> to vector<2x64xf32>
    %146 = arith.mulf %143, %129 : vector<2x64xf32>
    %147 = arith.mulf %142, %145 : vector<2x64xf32>
    %148 = arith.addf %146, %147 : vector<2x64xf32>
    %149 = math.tanh %148 : vector<2x64xf32>
    %150 = arith.mulf %144, %149 : vector<2x64xf32>
    %c12_41 = arith.constant 12 : index
    %c0_42 = arith.constant 0 : index
    %151 = vector.load %arg13[%c12_41, %c0_42] : memref<16x64xf32, #tpu.memory_space<vmem>>, vector<2x64xf32>
    tpu.vector_store %arg13[%c12_41, %c0_42], %150 {strides = array<i32>} : memref<16x64xf32, #tpu.memory_space<vmem>>, vector<2x64xf32>,
    %c2_43 = arith.constant 2 : index
    %c0_44 = arith.constant 0 : index
    %152 = vector.load %arg14[%c2_43, %c0_44] : memref<16x64xf32, #tpu.memory_space<vmem>>, vector<2x64xf32>
    tpu.vector_store %arg14[%c2_43, %c0_44], %150 {strides = array<i32>} : memref<16x64xf32, #tpu.memory_space<vmem>>, vector<2x64xf32>,
    %153 = vector.extract_strided_slice %14 {offsets = [14, 0], sizes = [2, 256], strides = [1, 1]} : vector<16x256xf32> to vector<2x256xf32>
    %154 = arith.truncf %150 : vector<2x64xf32> to vector<2x64xbf16>
    %cst_45 = arith.constant dense<0.000000e+00> : vector<2x256xf32>
    %155 = tpu.matmul %154, %15, %cst_45 {dimension_numbers = #tpu.dot_dimension_numbers<[1], [0], [0], [1], [0, 0, 1, 1], [], []>} : vector<2x64xbf16>, vector<64x256xbf16>, vector<2x256xf32> -> vector<2x256xf32>
    %156 = arith.addf %153, %155 : vector<2x256xf32>
    %157 = arith.mulf %156, %5 : vector<2x256xf32>
    %158 = math.tanh %157 : vector<2x256xf32>
    %159 = arith.mulf %158, %5 : vector<2x256xf32>
    %160 = arith.addf %159, %8 : vector<2x256xf32>
    %161 = vector.extract_strided_slice %160 {offsets = [0, 0], sizes = [2, 64], strides = [1, 1]} : vector<2x256xf32> to vector<2x64xf32>
    %162 = vector.extract_strided_slice %160 {offsets = [0, 64], sizes = [2, 64], strides = [1, 1]} : vector<2x256xf32> to vector<2x64xf32>
    %163 = vector.extract_strided_slice %160 {offsets = [0, 128], sizes = [2, 64], strides = [1, 1]} : vector<2x256xf32> to vector<2x64xf32>
    %164 = vector.extract_strided_slice %160 {offsets = [0, 192], sizes = [2, 64], strides = [1, 1]} : vector<2x256xf32> to vector<2x64xf32>
    %165 = arith.mulf %162, %148 : vector<2x64xf32>
    %166 = arith.mulf %161, %164 : vector<2x64xf32>
    %167 = arith.addf %165, %166 : vector<2x64xf32>
    %168 = math.tanh %167 : vector<2x64xf32>
    %169 = arith.mulf %163, %168 : vector<2x64xf32>
    %c14_46 = arith.constant 14 : index
    %c0_47 = arith.constant 0 : index
    %170 = vector.load %arg13[%c14_46, %c0_47] : memref<16x64xf32, #tpu.memory_space<vmem>>, vector<2x64xf32>
    tpu.vector_store %arg13[%c14_46, %c0_47], %169 {strides = array<i32>} : memref<16x64xf32, #tpu.memory_space<vmem>>, vector<2x64xf32>,
    %c0_48 = arith.constant 0 : index
    %c0_49 = arith.constant 0 : index
    %171 = vector.load %arg14[%c0_48, %c0_49] : memref<16x64xf32, #tpu.memory_space<vmem>>, vector<2x64xf32>
    tpu.vector_store %arg14[%c0_48, %c0_49], %169 {strides = array<i32>} : memref<16x64xf32, #tpu.memory_space<vmem>>, vector<2x64xf32>,
    %c0_50 = arith.constant 0 : index
    %c0_51 = arith.constant 0 : index
    %172 = vector.load %arg13[%c0_50, %c0_51] : memref<16x64xf32, #tpu.memory_space<vmem>>, vector<16x64xf32>
    %c0_52 = arith.constant 0 : index
    %c0_53 = arith.constant 0 : index
    %173 = vector.load %arg4[%c0_52, %c0_53] : memref<64x256xf32, #tpu.memory_space<vmem>>, vector<64x256xf32>
    %cst_54 = arith.constant dense<0.000000e+00> : vector<16x256xf32>
    %174 = tpu.matmul %172, %173, %cst_54 {dimension_numbers = #tpu.dot_dimension_numbers<[1], [0], [0], [1], [0, 0, 1, 1], [], []>} : vector<16x64xf32>, vector<64x256xf32>, vector<16x256xf32> -> vector<16x256xf32>
    %c0_55 = arith.constant 0 : index
    %c0_56 = arith.constant 0 : index
    %175 = vector.load %arg14[%c0_55, %c0_56] : memref<16x64xf32, #tpu.memory_space<vmem>>, vector<16x64xf32>
    %c0_57 = arith.constant 0 : index
    %c0_58 = arith.constant 0 : index
    %176 = vector.load %arg5[%c0_57, %c0_58] : memref<64x256xf32, #tpu.memory_space<vmem>>, vector<64x256xf32>
    %cst_59 = arith.constant dense<0.000000e+00> : vector<16x256xf32>
    %177 = tpu.matmul %175, %176, %cst_59 {dimension_numbers = #tpu.dot_dimension_numbers<[1], [0], [0], [1], [0, 0, 1, 1], [], []>} : vector<16x64xf32>, vector<64x256xf32>, vector<16x256xf32> -> vector<16x256xf32>
    %178 = arith.addf %174, %177 : vector<16x256xf32>
    %c0_60 = arith.constant 0 : index
    %c0_61 = arith.constant 0 : index
    %179 = vector.load %arg7[%c0_60, %c0_61] : memref<1x256xf32, #tpu.memory_space<vmem>>, vector<1x256xf32>
    %180 = vector.broadcast %179 : vector<1x256xf32> to vector<16x256xf32>
    %181 = arith.addf %178, %180 : vector<16x256xf32>
    %c0_62 = arith.constant 0 : index
    %c0_63 = arith.constant 0 : index
    %182 = vector.load %arg6[%c0_62, %c0_63] : memref<64x256xbf16, #tpu.memory_space<vmem>>, vector<64x256xbf16>
    %c1 = arith.constant 1 : index
    %c0_64 = arith.constant 0 : index
    %c0_65 = arith.constant 0 : index
    %183 = vector.load %arg8[%c1, %c0_64, %c0_65] : memref<2x2x64xf32, #tpu.memory_space<vmem>>, vector<1x2x64xf32>
    %184 = vector.shape_cast %183 : vector<1x2x64xf32> to vector<2x64xf32>
    %c1_66 = arith.constant 1 : index
    %c0_67 = arith.constant 0 : index
    %c0_68 = arith.constant 0 : index
    %185 = vector.load %arg9[%c1_66, %c0_67, %c0_68] : memref<2x2x64xf32, #tpu.memory_space<vmem>>, vector<1x2x64xf32>
    %186 = vector.shape_cast %185 : vector<1x2x64xf32> to vector<2x64xf32>
    %187 = vector.extract_strided_slice %181 {offsets = [0, 0], sizes = [2, 256], strides = [1, 1]} : vector<16x256xf32> to vector<2x256xf32>
    %188 = arith.truncf %184 : vector<2x64xf32> to vector<2x64xbf16>
    %cst_69 = arith.constant dense<0.000000e+00> : vector<2x256xf32>
    %189 = tpu.matmul %188, %182, %cst_69 {dimension_numbers = #tpu.dot_dimension_numbers<[1], [0], [0], [1], [0, 0, 1, 1], [], []>} : vector<2x64xbf16>, vector<64x256xbf16>, vector<2x256xf32> -> vector<2x256xf32>
    %190 = arith.addf %187, %189 : vector<2x256xf32>
    %191 = arith.mulf %190, %5 : vector<2x256xf32>
    %192 = math.tanh %191 : vector<2x256xf32>
    %193 = arith.mulf %192, %5 : vector<2x256xf32>
    %194 = arith.addf %193, %8 : vector<2x256xf32>
    %195 = vector.extract_strided_slice %194 {offsets = [0, 0], sizes = [2, 64], strides = [1, 1]} : vector<2x256xf32> to vector<2x64xf32>
    %196 = vector.extract_strided_slice %194 {offsets = [0, 64], sizes = [2, 64], strides = [1, 1]} : vector<2x256xf32> to vector<2x64xf32>
    %197 = vector.extract_strided_slice %194 {offsets = [0, 128], sizes = [2, 64], strides = [1, 1]} : vector<2x256xf32> to vector<2x64xf32>
    %198 = vector.extract_strided_slice %194 {offsets = [0, 192], sizes = [2, 64], strides = [1, 1]} : vector<2x256xf32> to vector<2x64xf32>
    %199 = arith.mulf %196, %186 : vector<2x64xf32>
    %200 = arith.mulf %195, %198 : vector<2x64xf32>
    %201 = arith.addf %199, %200 : vector<2x64xf32>
    %202 = math.tanh %201 : vector<2x64xf32>
    %203 = arith.mulf %197, %202 : vector<2x64xf32>
    %204 = vector.extract_strided_slice %181 {offsets = [2, 0], sizes = [2, 256], strides = [1, 1]} : vector<16x256xf32> to vector<2x256xf32>
    %205 = arith.truncf %203 : vector<2x64xf32> to vector<2x64xbf16>
    %cst_70 = arith.constant dense<0.000000e+00> : vector<2x256xf32>
    %206 = tpu.matmul %205, %182, %cst_70 {dimension_numbers = #tpu.dot_dimension_numbers<[1], [0], [0], [1], [0, 0, 1, 1], [], []>} : vector<2x64xbf16>, vector<64x256xbf16>, vector<2x256xf32> -> vector<2x256xf32>
    %207 = arith.addf %204, %206 : vector<2x256xf32>
    %208 = arith.mulf %207, %5 : vector<2x256xf32>
    %209 = math.tanh %208 : vector<2x256xf32>
    %210 = arith.mulf %209, %5 : vector<2x256xf32>
    %211 = arith.addf %210, %8 : vector<2x256xf32>
    %212 = vector.extract_strided_slice %211 {offsets = [0, 0], sizes = [2, 64], strides = [1, 1]} : vector<2x256xf32> to vector<2x64xf32>
    %213 = vector.extract_strided_slice %211 {offsets = [0, 64], sizes = [2, 64], strides = [1, 1]} : vector<2x256xf32> to vector<2x64xf32>
    %214 = vector.extract_strided_slice %211 {offsets = [0, 128], sizes = [2, 64], strides = [1, 1]} : vector<2x256xf32> to vector<2x64xf32>
    %215 = vector.extract_strided_slice %211 {offsets = [0, 192], sizes = [2, 64], strides = [1, 1]} : vector<2x256xf32> to vector<2x64xf32>
    %216 = arith.mulf %213, %201 : vector<2x64xf32>
    %217 = arith.mulf %212, %215 : vector<2x64xf32>
    %218 = arith.addf %216, %217 : vector<2x64xf32>
    %219 = math.tanh %218 : vector<2x64xf32>
    %220 = arith.mulf %214, %219 : vector<2x64xf32>
    %221 = vector.extract_strided_slice %181 {offsets = [4, 0], sizes = [2, 256], strides = [1, 1]} : vector<16x256xf32> to vector<2x256xf32>
    %222 = arith.truncf %220 : vector<2x64xf32> to vector<2x64xbf16>
    %cst_71 = arith.constant dense<0.000000e+00> : vector<2x256xf32>
    %223 = tpu.matmul %222, %182, %cst_71 {dimension_numbers = #tpu.dot_dimension_numbers<[1], [0], [0], [1], [0, 0, 1, 1], [], []>} : vector<2x64xbf16>, vector<64x256xbf16>, vector<2x256xf32> -> vector<2x256xf32>
    %224 = arith.addf %221, %223 : vector<2x256xf32>
    %225 = arith.mulf %224, %5 : vector<2x256xf32>
    %226 = math.tanh %225 : vector<2x256xf32>
    %227 = arith.mulf %226, %5 : vector<2x256xf32>
    %228 = arith.addf %227, %8 : vector<2x256xf32>
    %229 = vector.extract_strided_slice %228 {offsets = [0, 0], sizes = [2, 64], strides = [1, 1]} : vector<2x256xf32> to vector<2x64xf32>
    %230 = vector.extract_strided_slice %228 {offsets = [0, 64], sizes = [2, 64], strides = [1, 1]} : vector<2x256xf32> to vector<2x64xf32>
    %231 = vector.extract_strided_slice %228 {offsets = [0, 128], sizes = [2, 64], strides = [1, 1]} : vector<2x256xf32> to vector<2x64xf32>
    %232 = vector.extract_strided_slice %228 {offsets = [0, 192], sizes = [2, 64], strides = [1, 1]} : vector<2x256xf32> to vector<2x64xf32>
    %233 = arith.mulf %230, %218 : vector<2x64xf32>
    %234 = arith.mulf %229, %232 : vector<2x64xf32>
    %235 = arith.addf %233, %234 : vector<2x64xf32>
    %236 = math.tanh %235 : vector<2x64xf32>
    %237 = arith.mulf %231, %236 : vector<2x64xf32>
    %238 = vector.extract_strided_slice %181 {offsets = [6, 0], sizes = [2, 256], strides = [1, 1]} : vector<16x256xf32> to vector<2x256xf32>
    %239 = arith.truncf %237 : vector<2x64xf32> to vector<2x64xbf16>
    %cst_72 = arith.constant dense<0.000000e+00> : vector<2x256xf32>
    %240 = tpu.matmul %239, %182, %cst_72 {dimension_numbers = #tpu.dot_dimension_numbers<[1], [0], [0], [1], [0, 0, 1, 1], [], []>} : vector<2x64xbf16>, vector<64x256xbf16>, vector<2x256xf32> -> vector<2x256xf32>
    %241 = arith.addf %238, %240 : vector<2x256xf32>
    %242 = arith.mulf %241, %5 : vector<2x256xf32>
    %243 = math.tanh %242 : vector<2x256xf32>
    %244 = arith.mulf %243, %5 : vector<2x256xf32>
    %245 = arith.addf %244, %8 : vector<2x256xf32>
    %246 = vector.extract_strided_slice %245 {offsets = [0, 0], sizes = [2, 64], strides = [1, 1]} : vector<2x256xf32> to vector<2x64xf32>
    %247 = vector.extract_strided_slice %245 {offsets = [0, 64], sizes = [2, 64], strides = [1, 1]} : vector<2x256xf32> to vector<2x64xf32>
    %248 = vector.extract_strided_slice %245 {offsets = [0, 128], sizes = [2, 64], strides = [1, 1]} : vector<2x256xf32> to vector<2x64xf32>
    %249 = vector.extract_strided_slice %245 {offsets = [0, 192], sizes = [2, 64], strides = [1, 1]} : vector<2x256xf32> to vector<2x64xf32>
    %250 = arith.mulf %247, %235 : vector<2x64xf32>
    %251 = arith.mulf %246, %249 : vector<2x64xf32>
    %252 = arith.addf %250, %251 : vector<2x64xf32>
    %253 = math.tanh %252 : vector<2x64xf32>
    %254 = arith.mulf %248, %253 : vector<2x64xf32>
    %255 = vector.extract_strided_slice %181 {offsets = [8, 0], sizes = [2, 256], strides = [1, 1]} : vector<16x256xf32> to vector<2x256xf32>
    %256 = arith.truncf %254 : vector<2x64xf32> to vector<2x64xbf16>
    %cst_73 = arith.constant dense<0.000000e+00> : vector<2x256xf32>
    %257 = tpu.matmul %256, %182, %cst_73 {dimension_numbers = #tpu.dot_dimension_numbers<[1], [0], [0], [1], [0, 0, 1, 1], [], []>} : vector<2x64xbf16>, vector<64x256xbf16>, vector<2x256xf32> -> vector<2x256xf32>
    %258 = arith.addf %255, %257 : vector<2x256xf32>
    %259 = arith.mulf %258, %5 : vector<2x256xf32>
    %260 = math.tanh %259 : vector<2x256xf32>
    %261 = arith.mulf %260, %5 : vector<2x256xf32>
    %262 = arith.addf %261, %8 : vector<2x256xf32>
    %263 = vector.extract_strided_slice %262 {offsets = [0, 0], sizes = [2, 64], strides = [1, 1]} : vector<2x256xf32> to vector<2x64xf32>
    %264 = vector.extract_strided_slice %262 {offsets = [0, 64], sizes = [2, 64], strides = [1, 1]} : vector<2x256xf32> to vector<2x64xf32>
    %265 = vector.extract_strided_slice %262 {offsets = [0, 128], sizes = [2, 64], strides = [1, 1]} : vector<2x256xf32> to vector<2x64xf32>
    %266 = vector.extract_strided_slice %262 {offsets = [0, 192], sizes = [2, 64], strides = [1, 1]} : vector<2x256xf32> to vector<2x64xf32>
    %267 = arith.mulf %264, %252 : vector<2x64xf32>
    %268 = arith.mulf %263, %266 : vector<2x64xf32>
    %269 = arith.addf %267, %268 : vector<2x64xf32>
    %270 = math.tanh %269 : vector<2x64xf32>
    %271 = arith.mulf %265, %270 : vector<2x64xf32>
    %272 = vector.extract_strided_slice %181 {offsets = [10, 0], sizes = [2, 256], strides = [1, 1]} : vector<16x256xf32> to vector<2x256xf32>
    %273 = arith.truncf %271 : vector<2x64xf32> to vector<2x64xbf16>
    %cst_74 = arith.constant dense<0.000000e+00> : vector<2x256xf32>
    %274 = tpu.matmul %273, %182, %cst_74 {dimension_numbers = #tpu.dot_dimension_numbers<[1], [0], [0], [1], [0, 0, 1, 1], [], []>} : vector<2x64xbf16>, vector<64x256xbf16>, vector<2x256xf32> -> vector<2x256xf32>
    %275 = arith.addf %272, %274 : vector<2x256xf32>
    %276 = arith.mulf %275, %5 : vector<2x256xf32>
    %277 = math.tanh %276 : vector<2x256xf32>
    %278 = arith.mulf %277, %5 : vector<2x256xf32>
    %279 = arith.addf %278, %8 : vector<2x256xf32>
    %280 = vector.extract_strided_slice %279 {offsets = [0, 0], sizes = [2, 64], strides = [1, 1]} : vector<2x256xf32> to vector<2x64xf32>
    %281 = vector.extract_strided_slice %279 {offsets = [0, 64], sizes = [2, 64], strides = [1, 1]} : vector<2x256xf32> to vector<2x64xf32>
    %282 = vector.extract_strided_slice %279 {offsets = [0, 128], sizes = [2, 64], strides = [1, 1]} : vector<2x256xf32> to vector<2x64xf32>
    %283 = vector.extract_strided_slice %279 {offsets = [0, 192], sizes = [2, 64], strides = [1, 1]} : vector<2x256xf32> to vector<2x64xf32>
    %284 = arith.mulf %281, %269 : vector<2x64xf32>
    %285 = arith.mulf %280, %283 : vector<2x64xf32>
    %286 = arith.addf %284, %285 : vector<2x64xf32>
    %287 = math.tanh %286 : vector<2x64xf32>
    %288 = arith.mulf %282, %287 : vector<2x64xf32>
    %289 = vector.extract_strided_slice %181 {offsets = [12, 0], sizes = [2, 256], strides = [1, 1]} : vector<16x256xf32> to vector<2x256xf32>
    %290 = arith.truncf %288 : vector<2x64xf32> to vector<2x64xbf16>
    %cst_75 = arith.constant dense<0.000000e+00> : vector<2x256xf32>
    %291 = tpu.matmul %290, %182, %cst_75 {dimension_numbers = #tpu.dot_dimension_numbers<[1], [0], [0], [1], [0, 0, 1, 1], [], []>} : vector<2x64xbf16>, vector<64x256xbf16>, vector<2x256xf32> -> vector<2x256xf32>
    %292 = arith.addf %289, %291 : vector<2x256xf32>
    %293 = arith.mulf %292, %5 : vector<2x256xf32>
    %294 = math.tanh %293 : vector<2x256xf32>
    %295 = arith.mulf %294, %5 : vector<2x256xf32>
    %296 = arith.addf %295, %8 : vector<2x256xf32>
    %297 = vector.extract_strided_slice %296 {offsets = [0, 0], sizes = [2, 64], strides = [1, 1]} : vector<2x256xf32> to vector<2x64xf32>
    %298 = vector.extract_strided_slice %296 {offsets = [0, 64], sizes = [2, 64], strides = [1, 1]} : vector<2x256xf32> to vector<2x64xf32>
    %299 = vector.extract_strided_slice %296 {offsets = [0, 128], sizes = [2, 64], strides = [1, 1]} : vector<2x256xf32> to vector<2x64xf32>
    %300 = vector.extract_strided_slice %296 {offsets = [0, 192], sizes = [2, 64], strides = [1, 1]} : vector<2x256xf32> to vector<2x64xf32>
    %301 = arith.mulf %298, %286 : vector<2x64xf32>
    %302 = arith.mulf %297, %300 : vector<2x64xf32>
    %303 = arith.addf %301, %302 : vector<2x64xf32>
    %304 = math.tanh %303 : vector<2x64xf32>
    %305 = arith.mulf %299, %304 : vector<2x64xf32>
    %306 = vector.extract_strided_slice %181 {offsets = [14, 0], sizes = [2, 256], strides = [1, 1]} : vector<16x256xf32> to vector<2x256xf32>
    %307 = arith.truncf %305 : vector<2x64xf32> to vector<2x64xbf16>
    %cst_76 = arith.constant dense<0.000000e+00> : vector<2x256xf32>
    %308 = tpu.matmul %307, %182, %cst_76 {dimension_numbers = #tpu.dot_dimension_numbers<[1], [0], [0], [1], [0, 0, 1, 1], [], []>} : vector<2x64xbf16>, vector<64x256xbf16>, vector<2x256xf32> -> vector<2x256xf32>
    %309 = arith.addf %306, %308 : vector<2x256xf32>
    %310 = arith.mulf %309, %5 : vector<2x256xf32>
    %311 = math.tanh %310 : vector<2x256xf32>
    %312 = arith.mulf %311, %5 : vector<2x256xf32>
    %313 = arith.addf %312, %8 : vector<2x256xf32>
    %314 = vector.extract_strided_slice %313 {offsets = [0, 0], sizes = [2, 64], strides = [1, 1]} : vector<2x256xf32> to vector<2x64xf32>
    %315 = vector.extract_strided_slice %313 {offsets = [0, 64], sizes = [2, 64], strides = [1, 1]} : vector<2x256xf32> to vector<2x64xf32>
    %316 = vector.extract_strided_slice %313 {offsets = [0, 128], sizes = [2, 64], strides = [1, 1]} : vector<2x256xf32> to vector<2x64xf32>
    %317 = vector.extract_strided_slice %313 {offsets = [0, 192], sizes = [2, 64], strides = [1, 1]} : vector<2x256xf32> to vector<2x64xf32>
    %318 = arith.mulf %315, %303 : vector<2x64xf32>
    %319 = arith.mulf %314, %317 : vector<2x64xf32>
    %320 = arith.addf %318, %319 : vector<2x64xf32>
    %321 = math.tanh %320 : vector<2x64xf32>
    %322 = arith.mulf %316, %321 : vector<2x64xf32>
    %323 = vector.extract_strided_slice %322 {offsets = [0, 0], sizes = [2, 32], strides = [1, 1]} : vector<2x64xf32> to vector<2x32xf32>
    %324 = vector.extract_strided_slice %322 {offsets = [0, 32], sizes = [2, 32], strides = [1, 1]} : vector<2x64xf32> to vector<2x32xf32>
    %325 = vector.extract_strided_slice %323 {offsets = [0, 0], sizes = [1, 32], strides = [1, 1]} : vector<2x32xf32> to vector<1x32xf32>
    %326 = vector.extract_strided_slice %323 {offsets = [1, 0], sizes = [1, 32], strides = [1, 1]} : vector<2x32xf32> to vector<1x32xf32>
    %327 = vector.extract_strided_slice %324 {offsets = [0, 0], sizes = [1, 32], strides = [1, 1]} : vector<2x32xf32> to vector<1x32xf32>
    %328 = vector.extract_strided_slice %324 {offsets = [1, 0], sizes = [1, 32], strides = [1, 1]} : vector<2x32xf32> to vector<1x32xf32>
    %329 = tpu.concatenate %325, %326 in 1 : vector<1x32xf32>, vector<1x32xf32> -> vector<1x64xf32>
    %330 = tpu.concatenate %327, %328 in 1 : vector<1x32xf32>, vector<1x32xf32> -> vector<1x64xf32>
    %331 = tpu.concatenate %329, %330 in 0 : vector<1x64xf32>, vector<1x64xf32> -> vector<2x64xf32>
    %c0_77 = arith.constant 0 : index
    %c0_78 = arith.constant 0 : index
    %332 = vector.load %arg10[%c0_77, %c0_78] : memref<64x32xf32, #tpu.memory_space<vmem>>, vector<64x32xf32>
    %cst_79 = arith.constant dense<0.000000e+00> : vector<2x32xf32>
    %333 = tpu.matmul %331, %332, %cst_79 {dimension_numbers = #tpu.dot_dimension_numbers<[1], [0], [0], [1], [0, 0, 1, 1], [], []>} : vector<2x64xf32>, vector<64x32xf32>, vector<2x32xf32> -> vector<2x32xf32>
    %c0_80 = arith.constant 0 : index
    %c0_81 = arith.constant 0 : index
    %334 = vector.load %arg11[%c0_80, %c0_81] : memref<1x32xf32, #tpu.memory_space<vmem>>, vector<1x32xf32>
    %335 = vector.broadcast %334 : vector<1x32xf32> to vector<2x32xf32>
    %336 = arith.addf %333, %335 : vector<2x32xf32>
    %cst_82 = arith.constant 2.000000e+01 : f32
    %337 = vector.broadcast %cst_82 : f32 to vector<2x32xf32>
    %338 = arith.cmpf ogt, %336, %337 : vector<2x32xf32>
    %cst_83 = arith.constant 2.000000e+01 : f32
    %339 = vector.broadcast %cst_83 : f32 to vector<2x32xf32>
    %340 = arith.minimumf %336, %339 : vector<2x32xf32>
    %341 = math.exp %340 : vector<2x32xf32>
    %342 = math.log1p %341 : vector<2x32xf32>
    %343 = arith.select %338, %336, %342 : vector<2x32xi1>, vector<2x32xf32>
    %344 = tpu.iota {dimensions = array<i32: 1>} : vector<2x32xi32>
    %c16_i32 = arith.constant 16 : i32
    %345 = vector.broadcast %c16_i32 : i32 to vector<2x32xi32>
    %346 = arith.cmpi sge, %344, %345 : vector<2x32xi32>
    %347 = arith.select %346, %343, %336 : vector<2x32xi1>, vector<2x32xf32>
    %c0_84 = arith.constant 0 : index
    %c0_85 = arith.constant 0 : index
    %348 = vector.load %arg12[%c0_84, %c0_85] : memref<2x32xf32, #tpu.memory_space<vmem>>, vector<2x32xf32>
    tpu.vector_store %arg12[%c0_84, %c0_85], %347 {strides = array<i32>} : memref<2x32xf32, #tpu.memory_space<vmem>>, vector<2x32xf32>,
    return
  }
}

</mosaic_0001>

<bundles_post_ra>
// kernel: bilstm_encoder_forward.1
= control target key start
LH: loop header
LB: loop body
LE: loop exit
PB: predicated region body
PF: predicated region fallthrough
CT: control target
= control target key end

     0   :  { %17 = vsyncpa [#allocation5], 0  ;;  %s2870_s0 = inlined_call_operand.vmem [shape: f32[16,32], index: 0, kind: input, shape index: {}]   ;;  %s2871_s1 = inlined_call_operand.vmem [shape: f32[32,256], index: 1, kind: input, shape index: {}]   ;;  %s2872_s2 = inlined_call_operand.hbm [shape: bf16[64,256], index: 2, kind: input, shape index: {}]   ;;  %s2873_s3 = inlined_call_operand.vmem [shape: f32[1,256], index: 3, kind: input, shape index: {}]   ;;  %s2874_s4 = inlined_call_operand.vmem [shape: f32[64,256], index: 4, kind: input, shape index: {}]   ;;  %s2875_s5 = inlined_call_operand.hbm [shape: f32[64,256], index: 5, kind: input, shape index: {}]   ;;  %s2876_s6 = inlined_call_operand.hbm [shape: bf16[64,256], index: 6, kind: input, shape index: {}]   ;;  %s2877_s7 = inlined_call_operand.vmem [shape: f32[1,256], index: 7, kind: input, shape index: {}]   ;;  %s2878_s8 = inlined_call_operand.vmem [shape: f32[2,2,64], index: 8, kind: input, shape index: {}]   ;;  %s2879_s9 = inlined_call_operand.vmem [shape: f32[2,2,64], index: 9, kind: input, shape index: {}]   ;;  %s2880_s10 = inlined_call_operand.vmem [shape: f32[64,32], index: 10, kind: input, shape index: {}]   ;;  %s2881_s11 = inlined_call_operand.vmem [shape: f32[1,32], index: 11, kind: input, shape index: {}]   ;;  %s2882_s12 = inlined_call_operand.vmem [shape: f32[2,32], index: 12, kind: output, shape index: {}]  }
   0x1   :  { %18 = vsyncpa [#allocation7], 0  ;;  %s2236_s21 = smov [#allocation6]  }
   0x2   :  { %s44_s22 = sshll.u32 %s2236_s21, 4  ;;  %s45_s22 = int_to_ptr.vmem [resolvable:$true] %s44_s22 }
   0x3   :  { %s2180_s23 = scalar_lea.vmem %s45_s22, 2048  ;;  %p2185_p1 = scmp.lt.s32.totalorder %s45_s22, %s45_s22 }
   0x4   :  { %p2181_p0 = scmp.ne.s32.totalorder %s45_s22, %s2180_s23  ;;  %p2186_p2 = scmp.lt.s32.totalorder %s2180_s23, %s2180_s23 }
   0x6   :  { %p2187_p3 = por %p2186_p2, %p2185_p1 }
   0x8   :  { %p2188_p4 = pnand %p2187_p3, %p2181_p0 }
   0xa   :  { %2191 = shalt.err (!%p2188_p4)
}
   0xb   :  { %s2237_s24 = smov 256   ;;  %s2238_s25 = smov 16  }
   0xc   :  { %50 = dma.hbm_to_vmem [thread:$0]  %s2875_s5, 2048, %s45_s22, [#allocation7], %s2237_s24, %s2237_s24, %s2238_s25  }
   0xd   :  { %s2239_s28 = smov [#allocation4]  }
   0xe   :  { %s28_s29 = sshll.u32 %s2239_s28, 4  ;;  %s29_s29 = int_to_ptr.vmem [resolvable:$true] %s28_s29 }
   0xf   :  { %s2200_s30 = scalar_lea.vmem %s29_s29, 1024  ;;  %p2205_p6 = scmp.lt.s32.totalorder %s29_s29, %s29_s29 }
  0x10   :  { %p2201_p5 = scmp.ne.s32.totalorder %s29_s29, %s2200_s30  ;;  %p2206_p7 = scmp.lt.s32.totalorder %s2200_s30, %s2200_s30 }
  0x12   :  { %p2207_p8 = por %p2206_p7, %p2205_p6 }
  0x14   :  { %p2208_p9 = pnand %p2207_p8, %p2201_p5 }
  0x16   :  { %2211 = shalt.err (!%p2208_p9)
}
  0x17   :  { %s2240_s13 = smov 128   ;;  %s2241_s14 = smov 8  }
  0x18   :  { %34 = dma.hbm_to_vmem [thread:$0]  %s2872_s2, 1024, %s29_s29, [#allocation5], %s2240_s13, %s2240_s13, %s2241_s14  }
  0x19   :  { %s2242_s17 = smov [#allocation8]  }
  0x1a   :  { %s56_s18 = sshll.u32 %s2242_s17, 4  ;;  %s57_s18 = int_to_ptr.vmem [resolvable:$true] %s56_s18 }
  0x1b   :  { %s2220_s5 = scalar_lea.vmem %s57_s18, 1024  ;;  %p2225_p11 = scmp.lt.s32.totalorder %s57_s18, %s57_s18 }
  0x1c   :  { %p2221_p10 = scmp.ne.s32.totalorder %s57_s18, %s2220_s5  ;;  %p2226_p12 = scmp.lt.s32.totalorder %s2220_s5, %s2220_s5 }
  0x1e   :  { %p2227_p13 = por %p2226_p12, %p2225_p11 }
  0x20   :  { %p2228_p0 = pnand %p2227_p13, %p2221_p10 }
  0x22   :  { %2231 = shalt.err (!%p2228_p0)
}
  0x23   :  { %62 = dma.hbm_to_vmem [thread:$0]  %s2876_s6, 1024, %s57_s18, [#allocation7], %s2240_s13, %s2240_s13, %s2241_s14  }
  0x24   :  { %2232 = dma.done.wait [#allocation5], 1024  }
  0x25   :  { %2233 = vsyncadd [#allocation5], 4294966272 }
  0x26   :  { %2234 = dma.done.wait [#allocation7], 3072  }
  0x27   :  { %2235 = vsyncadd [#allocation7], 4294964224  ;;  %v2243_v0 = vmov 0.0   ;;  %v2244_v1 = vmov 0   ;;  %v2326_v2 = vld [vmem:[#allocation4 + $0x34] ss:$8 sps:$4 sm:$0xff]   ;;  %v83_v21 = vlaneseq }
  0x28   :  { %185 = vmatprep.mubr.f32.mxu0 %v2243_v0  ;;  %285 = vmatprep.mubr.bf16.mxu1 %v2244_v1  ;;  %v2328_v3 = vld [vmem:[#allocation4 + $0x30] ss:$8 sps:$4 sm:$0xff]   ;;  %v2334_v5 = vld [vmem:[#allocation4 + $0x24] ss:$8 sps:$4 sm:$0xff]   ;;  %v2340_v7 = vld [vmem:[#allocation4 + $0x20] ss:$8 sps:$4 sm:$0xff]  }
  0x29   :  { %v101_v4 = vld [vmem:[%s2871_s1 + $0x38] sm:$0xff]  ;;  %261 = vmatprep.subr.bf16.mxu1 %v2326_v2  ;;  %v100_v6 = vld [vmem:[%s2871_s1 + $0x30] sm:$0xff]  ;;  %v99_v8 = vld [vmem:[%s2871_s1 + $0x28] sm:$0xff]  ;;  %vm114_vm0 = vcmask 261120   ;;  %vm249_vm1 = vcmask 523264   ;;  %v2402_v22 = vshrl.u32 %v83_v21, 7 }
  0x2a   :  { %145 = vmatprep.subr.mxu0 %v101_v4  ;;  %262 = vmatpush1.bf16.msra.mxu1 %v2328_v3  ;;  %v98_v9 = vld [vmem:[%s2871_s1 + $0x20] sm:$0xff]  ;;  %v97_v10 = vld [vmem:[%s2871_s1 + $0x18] sm:$0xff]  ;;  %v96_v12 = vld [vmem:[%s2871_s1 + $0x10] sm:$0xff]  ;;  %v2404_v23 = vand.u32 127, %v83_v21  ;;  %v2245_v32 = vmov 0.5   ;;  %vm325_vm3 = vcmask 517120  }
  0x2b   :  { %146 = vmatpush1.msra.mxu0 %v100_v6  ;;  %263 = vmatprep.subr.bf16.mxu1 %v2334_v5  ;;  %v2352_v11 = vld [vmem:[#allocation4 + $0x14] ss:$8 sps:$4 sm:$0xff]   ;;  %v2357_v13 = vld [vmem:[#allocation4 + $0x10] ss:$8 sps:$4 sm:$0xff]   ;;  %v95_v14 = vld [vmem:[%s2871_s1 + $0x8] sm:$0xff]  ;;  %v110_v24 = vsub.s32 1, %v2402_v22 }
  0x2c   :  { %147 = vmatprep.subr.mxu0 %v99_v8  ;;  %v94_v15 = vld [vmem:[%s2871_s1] sm:$0xff]  ;;  %v85_v27 = vadd.s32 128, %v2404_v23  ;;  %v106_v44 = vsub.s32 0, %v2402_v22  ;;  %v93_v54 = vld [vmem:[%s2870_s0 + $0x8] sm:$0xff]  ;;  %vm409_vm4 = vcmask 519170   ;;  %vm495_vm5 = vcmask 521220  }
  0x2d   :  { %148 = vmatpush1.msra.mxu0 %v98_v9  ;;  %v92_v16 = vld [vmem:[%s2870_s0] sm:$0xff]  ;;  %vm581_vm6 = vcmask 523270   ;;  %vm2247_vm7 = vmmov 0   ;;  %s2249_s26 = smov 32   ;;  %vm1850_vm8 = vcmask 1040384   ;;  %vm1954_vm10 = vcmp.ge.s32.totalorder %v2404_v23, 16 }
  0x2e   :  { %149 = vmatprep.subr.mxu0 %v97_v10  ;;  %264 = vmatpush1.bf16.msra.mxu1 %v2340_v7  ;;  %v2370_v17 = vld [vmem:[#allocation4 + $0x4] ss:$8 sps:$4 sm:$0xff]   ;;  %v2372_v18 = vld [vmem:[#allocation4] ss:$8 sps:$4 sm:$0xff]   ;;  %vm87_vm2 = vcmp.ge.s32.totalorder %v85_v27, 192  ;;  %vm1956_vm12 = vcmask 254976  }
  0x2f   :  { %150 = vmatpush1.msra.mxu0 %v96_v12  ;;  %265 = vmatprep.subr.bf16.mxu1 %v2352_v11  ;;  %v206_v19 = vld [vmem:[%s2878_s8] sm:$0x3]  ;;  %v2418_v33 = vsel %vm87_vm2, 1.0, %v2245_v32  ;;  %v2422_v40 = vsel %vm87_vm2, 0.0, %v2245_v32 }
  0x30   :  { %151 = vmatprep.subr.mxu0 %v95_v14  ;;  %v208_v20 = vpack.c.bf16 %v206_v19, %v206_v19  ;;  %v102_v25 = vld [vmem:[%s2873_s3] sm:$0x3]  ;;  %s2246_s3 = smov 64  }
  0x31   :  { %152 = vmatpush1.msra.mxu0 %v94_v15  ;;  %v2413_v28 = vrot.slane %v102_v25, %v110_v24  ;;  %v207_v43 = vld [vmem:[%s2879_s9] sm:$0x3]  ;;  %v2434_v45 = vrot.slane %v102_v25, %v106_v44 }
  0x32   :  { %1964 = vmatmul.mubr.msk.f32.vlgmr.msra.gmra.mxu0 %vm114_vm0, %v92_v16  ;;  %340 = vmatprep.subr.bf16.mxu0 %v2326_v2 }
  0x33   :  { %266 = vmatpush1.bf16.msra.mxu1 %v2357_v13  ;;  %341 = vmatpush1.bf16.msra.mxu0 %v2328_v3 }
  0x34   :  { %267 = vmatprep.subr.bf16.mxu1 %v2370_v17  ;;  %342 = vmatprep.subr.bf16.mxu0 %v2334_v5 }
  0x35   :  { %191 = vmatprep.mubr.f32.mxu0 %v2243_v0 }
  0x36   :  { %1965 = vmatmul.mubr.msk.f32.gmra.mxu0 %vm114_vm0, %v93_v54 }
  0x37   :  { %268 = vmatpush1.bf16.msra.mxu1 %v2372_v18  ;;  %343 = vmatpush1.bf16.msra.mxu0 %v2340_v7 }
  0x38   :  { %344 = vmatprep.subr.bf16.mxu0 %v2352_v11  ;;  %426 = vmatprep.subr.bf16.mxu1 %v2326_v2 }
  0x39   :  { %364 = vmatprep.mubr.bf16.mxu0 %v2244_v1 }
  0x3a   :  { %1974 = vmatmul.mubr.msk.bf16.vlgmr.msra.gmra.mxu1 %vm249_vm1, %v208_v20 }
  0x3b   :  { %345 = vmatpush1.bf16.msra.mxu0 %v2357_v13  ;;  %427 = vmatpush1.bf16.msra.mxu1 %v2328_v3 }
  0x3c   :  { %346 = vmatprep.subr.bf16.mxu0 %v2370_v17  ;;  %428 = vmatprep.subr.bf16.mxu1 %v2334_v5 }
  0x3d   :  { %450 = vmatprep.mubr.bf16.mxu1 %v2244_v1 }
  0x3f   :  { %347 = vmatpush1.bf16.msra.mxu0 %v2372_v18  ;;  %429 = vmatpush1.bf16.msra.mxu1 %v2340_v7 }
  0x40   :  { %430 = vmatprep.subr.bf16.mxu1 %v2352_v11  ;;  %512 = vmatprep.subr.bf16.mxu0 %v2326_v2 }
  0x43   :  { %431 = vmatpush1.bf16.msra.mxu1 %v2357_v13 }
  0x44   :  { %432 = vmatprep.subr.bf16.mxu1 %v2370_v17 }
  0x47   :  { %433 = vmatpush1.bf16.msra.mxu1 %v2372_v18 }
  0x48   :  { %598 = vmatprep.subr.bf16.mxu1 %v2326_v2 }
  0xf2   :  { %v187_v26 = vpop.f32.mrf.mxu0 }
  0xf3   :  { %v2437_v46 = vadd.f32 %v187_v26, %v2434_v45 }
  0xf4   :  { %v189_v29 = vpop.f32.mrf.mxu0 }
  0xf5   :  { %v2416_v31 = vadd.f32 %v189_v29, %v2413_v28 }
  0xf6   :  { %v2459_v63 = vpop.f32.mrf.mxu0 }
  0xf8   :  { %v2461_v4 = vpop.f32.mrf.mxu0 }
  0xfa   :  { %v287_v30 = vpop.f32.mrf.mxu1 }
  0xfb   :  { %v294_v47 = vadd.f32 %v287_v30, %v2437_v46 }
  0xfc   :  { %v289_v34 = vpop.f32.mrf.mxu1 }
  0xfd   :  { %v295_v35 = vadd.f32 %v289_v34, %v2416_v31  ;;  %v296_v48 = vmul.f32 0.5, %v294_v47 }
  0xfe   :  { %v291_v36 = vpop.f32.mrf.mxu1 }
  0xff   :  { %v297_v37 = vmul.f32 %v295_v35, %v2418_v33 }
 0x100   :  { %v292_v38 = vpop.f32.mrf.mxu1 }
 0x101   :  { %2072 = vtanh.f32 %v297_v37 }
 0x102   :  { %2074 = vtanh.f32 %v296_v48 }
 0x10e   :  { %v2073_v39 = vpop.eup %2072 }
 0x10f   :  { %v301_v41 = vmul.f32 %v2073_v39, %v2418_v33  ;;  %v2075_v49 = vpop.eup %2074 }
 0x110   :  { %v300_v50 = vmul.f32 0.5, %v2075_v49 }
 0x111   :  { %v303_v42 = vadd.f32 %v301_v41, %v2422_v40 }
 0x112   :  { %v302_v51 = vadd.f32 0.5, %v300_v50 }
 0x113   :  { %310 = vrot.lane.b32.xlu0 %v303_v42, %s2246_s3 }
 0x117   :  { %305 = vrot.lane.b32.xlu0 %v207_v43, %s2246_s3 }
 0x185   :  { %v311_v52 = vpop.permute.xlu0 %310 }
 0x186   :  { %v313_v53 = vmul.f32 %v311_v52, %v302_v51 }
 0x188   :  { %315 = vrot.lane.b32.xlu1 %v313_v53, %s2246_s3 }
 0x189   :  { %v306_v55 = vpop.permute.xlu0 %305 }
 0x18a   :  { %v308_v56 = vmul.f32 %v306_v55, %v302_v51 }
 0x1fa   :  { %v316_v57 = vpop.permute.xlu1 %315 }
 0x1fb   :  { %v318_v58 = vadd.f32 %v316_v57, %v308_v56 }
 0x1fd   :  { %2076 = vtanh.f32 %v318_v58  ;;  %v390_v35 = vrot.slane %v318_v58, 6 }
 0x20a   :  { %v2077_v59 = vpop.eup %2076 }
 0x20b   :  { %321 = vrot.lane.b32.xlu1 %v2077_v59, %s2246_s3 }
 0x27d   :  { %v322_v60 = vpop.permute.xlu1 %321 }
 0x27e   :  { %v324_v61 = vmul.f32 %v322_v60, %v303_v42 }
 0x280   :  { %326 = vst.msk [vmem:[#allocation2] sm:$0x3] %vm325_vm3, %v324_v61  ;;  %327 = vst.msk [vmem:[#allocation3 + $0xe] sm:$0x3] %vm325_vm3, %v324_v61  ;;  %v328_v62 = vpack.c.bf16 %v324_v61, %v324_v61 }
 0x282   :  { %1975 = vmatmul.mubr.msk.bf16.vlgmr.msra.gmra.mxu0 %vm249_vm1, %v328_v62 }
 0x283   :  { %513 = vmatpush1.bf16.msra.mxu0 %v2328_v3  ;;  %536 = vmatprep.mubr.bf16.mxu0 %v2244_v1 }
 0x284   :  { %514 = vmatprep.subr.bf16.mxu0 %v2334_v5 }
 0x287   :  { %515 = vmatpush1.bf16.msra.mxu0 %v2340_v7 }
 0x288   :  { %516 = vmatprep.subr.bf16.mxu0 %v2352_v11 }
 0x28b   :  { %517 = vmatpush1.bf16.msra.mxu0 %v2357_v13 }
 0x28c   :  { %518 = vmatprep.subr.bf16.mxu0 %v2370_v17 }
 0x28f   :  { %519 = vmatpush1.bf16.msra.mxu0 %v2372_v18 }
 0x290   :  { %675 = vmatprep.subr.bf16.mxu0 %v2326_v2 }
 0x342   :  { %v366_v6 = vpop.f32.mrf.mxu0 }
 0x343   :  { %v375_v21 = vrot.slane %v366_v6, 6 }
 0x344   :  { %v368_v8 = vpop.f32.mrf.mxu0 }
 0x345   :  { %v376_v9 = vrot.slane %v368_v8, 6  ;;  %v379_v25 = vadd.f32 %v375_v21, %v2437_v46 }
 0x346   :  { %v370_v10 = vpop.f32.mrf.mxu0 }
 0x347   :  { %v380_v12 = vadd.f32 %v376_v9, %v2416_v31  ;;  %v381_v26 = vmul.f32 0.5, %v379_v25 }
 0x348   :  { %v371_v14 = vpop.f32.mrf.mxu0 }
 0x349   :  { %v382_v15 = vmul.f32 %v380_v12, %v2418_v33 }
 0x34b   :  { %2078 = vtanh.f32 %v382_v15 }
 0x34c   :  { %2080 = vtanh.f32 %v381_v26 }
 0x358   :  { %v2079_v16 = vpop.eup %2078 }
 0x359   :  { %v386_v19 = vmul.f32 %v2079_v16, %v2418_v33  ;;  %v2081_v27 = vpop.eup %2080 }
 0x35a   :  { %v385_v29 = vmul.f32 0.5, %v2081_v27 }
 0x35b   :  { %v388_v20 = vadd.f32 %v386_v19, %v2422_v40 }
 0x35c   :  { %v387_v30 = vadd.f32 0.5, %v385_v29 }
 0x35d   :  { %394 = vrot.lane.b32.xlu0 %v388_v20, %s2246_s3 }
 0x35e   :  { %v392_v36 = vmul.f32 %v390_v35, %v387_v30 }
 0x3cf   :  { %v395_v32 = vpop.permute.xlu0 %394 }
 0x3d0   :  { %v397_v34 = vmul.f32 %v395_v32, %v387_v30 }
 0x3d2   :  { %399 = vrot.lane.b32.xlu1 %v397_v34, %s2246_s3 }
 0x444   :  { %v400_v37 = vpop.permute.xlu1 %399 }
 0x445   :  { %v402_v38 = vadd.f32 %v400_v37, %v392_v36 }
 0x447   :  { %2082 = vtanh.f32 %v402_v38  ;;  %v476_v10 = vrot.slane %v402_v38, 6 }
 0x454   :  { %v2083_v39 = vpop.eup %2082 }
 0x455   :  { %405 = vrot.lane.b32.xlu0 %v2083_v39, %s2246_s3 }
 0x4c7   :  { %v406_v41 = vpop.permute.xlu0 %405 }
 0x4c8   :  { %v408_v42 = vmul.f32 %v406_v41, %v388_v20 }
 0x4ca   :  { %410 = vst.msk [vmem:[#allocation2] sm:$0xc] %vm409_vm4, %v408_v42  ;;  %411 = vst.msk [vmem:[#allocation3 + $0xa] sm:$0xc] %vm409_vm4, %v408_v42  ;;  %v412_v43 = vpack.c.bf16 %v408_v42, %v408_v42 }
 0x4cc   :  { %v414_v47 = vrot.slane %v412_v43, 1 }
 0x4ce   :  { %1976 = vmatmul.mubr.msk.bf16.vlgmr.msra.gmra.mxu1 %vm249_vm1, %v414_v47 }
 0x4cf   :  { %599 = vmatpush1.bf16.msra.mxu1 %v2328_v3  ;;  %622 = vmatprep.mubr.bf16.mxu1 %v2244_v1 }
 0x4d0   :  { %600 = vmatprep.subr.bf16.mxu1 %v2334_v5 }
 0x4d3   :  { %601 = vmatpush1.bf16.msra.mxu1 %v2340_v7 }
 0x4d4   :  { %602 = vmatprep.subr.bf16.mxu1 %v2352_v11 }
 0x4d7   :  { %603 = vmatpush1.bf16.msra.mxu1 %v2357_v13 }
 0x4d8   :  { %604 = vmatprep.subr.bf16.mxu1 %v2370_v17 }
 0x4db   :  { %605 = vmatpush1.bf16.msra.mxu1 %v2372_v18 }
 0x4dc   :  { %760 = vmatprep.subr.bf16.mxu1 %v2326_v2 }
 0x58e   :  { %v452_v48 = vpop.f32.mrf.mxu1 }
 0x58f   :  { %v461_v58 = vrot.slane %v452_v48, 4 }
 0x590   :  { %v454_v49 = vpop.f32.mrf.mxu1 }
 0x591   :  { %v462_v50 = vrot.slane %v454_v49, 4  ;;  %v465_v59 = vadd.f32 %v461_v58, %v2437_v46  ;;  %v2524_v58 = vadd.f32 %v2461_v4, %v2413_v28 }
 0x592   :  { %v456_v51 = vpop.f32.mrf.mxu1 }
 0x593   :  { %v466_v52 = vadd.f32 %v462_v50, %v2416_v31  ;;  %v467_v60 = vmul.f32 0.5, %v465_v59 }
 0x594   :  { %v457_v53 = vpop.f32.mrf.mxu1 }
 0x595   :  { %v468_v54 = vmul.f32 %v466_v52, %v2418_v33 }
 0x597   :  { %2084 = vtanh.f32 %v468_v54 }
 0x598   :  { %2086 = vtanh.f32 %v467_v60 }
 0x5a4   :  { %v2085_v55 = vpop.eup %2084 }
 0x5a5   :  { %v472_v56 = vmul.f32 %v2085_v55, %v2418_v33  ;;  %v2087_v61 = vpop.eup %2086 }
 0x5a6   :  { %v471_v62 = vmul.f32 0.5, %v2087_v61 }
 0x5a7   :  { %v474_v57 = vadd.f32 %v472_v56, %v2422_v40 }
 0x5a8   :  { %v473_v6 = vadd.f32 0.5, %v471_v62 }
 0x5a9   :  { %480 = vrot.lane.b32.xlu1 %v474_v57, %s2246_s3 }
 0x5aa   :  { %v478_v12 = vmul.f32 %v476_v10, %v473_v6 }
 0x61b   :  { %v481_v8 = vpop.permute.xlu1 %480 }
 0x61c   :  { %v483_v9 = vmul.f32 %v481_v8, %v473_v6 }
 0x61e   :  { %485 = vrot.lane.b32.xlu0 %v483_v9, %s2246_s3 }
 0x690   :  { %v486_v14 = vpop.permute.xlu0 %485 }
 0x691   :  { %v488_v15 = vadd.f32 %v486_v14, %v478_v12  ;;  %v2533_v12 = vadd.f32 %v2459_v63, %v2434_v45 }
 0x693   :  { %2088 = vtanh.f32 %v488_v15  ;;  %v562_v49 = vrot.slane %v488_v15, 6 }
 0x6a0   :  { %v2089_v16 = vpop.eup %2088 }
 0x6a1   :  { %491 = vrot.lane.b32.xlu1 %v2089_v16, %s2246_s3 }
 0x713   :  { %v492_v19 = vpop.permute.xlu1 %491 }
 0x714   :  { %v494_v20 = vmul.f32 %v492_v19, %v474_v57 }
 0x716   :  { %496 = vst.msk [vmem:[#allocation2] sm:$0x30] %vm495_vm5, %v494_v20  ;;  %497 = vst.msk [vmem:[#allocation3 + $0x6] sm:$0x30] %vm495_vm5, %v494_v20  ;;  %v498_v21 = vpack.c.bf16 %v494_v20, %v494_v20 }
 0x718   :  { %v500_v25 = vrot.slane %v498_v21, 2 }
 0x71a   :  { %1977 = vmatmul.mubr.msk.bf16.vlgmr.msra.gmra.mxu0 %vm249_vm1, %v500_v25 }
 0x71b   :  { %676 = vmatpush1.bf16.msra.mxu0 %v2328_v3  ;;  %699 = vmatprep.mubr.bf16.mxu0 %v2244_v1 }
 0x71c   :  { %677 = vmatprep.subr.bf16.mxu0 %v2334_v5 }
 0x71f   :  { %678 = vmatpush1.bf16.msra.mxu0 %v2340_v7 }
 0x720   :  { %679 = vmatprep.subr.bf16.mxu0 %v2352_v11 }
 0x723   :  { %680 = vmatpush1.bf16.msra.mxu0 %v2357_v13 }
 0x724   :  { %681 = vmatprep.subr.bf16.mxu0 %v2370_v17 }
 0x727   :  { %682 = vmatpush1.bf16.msra.mxu0 %v2372_v18 }
 0x728   :  { %845 = vmatprep.subr.bf16.mxu0 %v2326_v2 }
 0x7da   :  { %v538_v26 = vpop.f32.mrf.mxu0 }
 0x7db   :  { %v547_v39 = vrot.slane %v538_v26, 2 }
 0x7dc   :  { %v540_v27 = vpop.f32.mrf.mxu0 }
 0x7dd   :  { %v548_v29 = vrot.slane %v540_v27, 2  ;;  %v551_v2 = vadd.f32 %v547_v39, %v2437_v46 }
 0x7de   :  { %v542_v30 = vpop.f32.mrf.mxu0 }
 0x7df   :  { %v552_v32 = vadd.f32 %v548_v29, %v2416_v31  ;;  %v553_v41 = vmul.f32 0.5, %v551_v2 }
 0x7e0   :  { %v543_v34 = vpop.f32.mrf.mxu0 }
 0x7e1   :  { %v554_v35 = vmul.f32 %v552_v32, %v2418_v33 }
 0x7e3   :  { %2090 = vtanh.f32 %v554_v35 }
 0x7e4   :  { %2092 = vtanh.f32 %v553_v41 }
 0x7f0   :  { %v2091_v36 = vpop.eup %2090 }
 0x7f1   :  { %v558_v37 = vmul.f32 %v2091_v36, %v2418_v33  ;;  %v2093_v42 = vpop.eup %2092 }
 0x7f2   :  { %v557_v43 = vmul.f32 0.5, %v2093_v42 }
 0x7f3   :  { %v560_v38 = vadd.f32 %v558_v37, %v2422_v40 }
 0x7f4   :  { %v559_v47 = vadd.f32 0.5, %v557_v43 }
 0x7f5   :  { %566 = vrot.lane.b32.xlu0 %v560_v38, %s2246_s3 }
 0x7f6   :  { %v564_v50 = vmul.f32 %v562_v49, %v559_v47 }
 0x867   :  { %v567_v31 = vpop.permute.xlu0 %566 }
 0x868   :  { %v569_v48 = vmul.f32 %v567_v31, %v559_v47 }
 0x86a   :  { %571 = vrot.lane.b32.xlu1 %v569_v48, %s2246_s3 }
 0x8dc   :  { %v572_v51 = vpop.permute.xlu1 %571 }
 0x8dd   :  { %v574_v52 = vadd.f32 %v572_v51, %v564_v50 }
 0x8df   :  { %2094 = vtanh.f32 %v574_v52  ;;  %v642_v21 = vrot.slane %v574_v52, 6 }
 0x8ec   :  { %v2095_v53 = vpop.eup %2094 }
 0x8ed   :  { %577 = vrot.lane.b32.xlu0 %v2095_v53, %s2246_s3 }
 0x95f   :  { %v578_v54 = vpop.permute.xlu0 %577 }
 0x960   :  { %v580_v46 = vmul.f32 %v578_v54, %v560_v38 }
 0x962   :  { %582 = vst.msk [vmem:[#allocation2] sm:$0xc0] %vm581_vm6, %v580_v46  ;;  %583 = vst.msk [vmem:[#allocation3 + $0x2] sm:$0xc0] %vm581_vm6, %v580_v46  ;;  %v584_v55 = vpack.c.bf16 %v580_v46, %v580_v46 }
 0x964   :  { %v586_v56 = vrot.slane %v584_v55, 3 }
 0x966   :  { %1978 = vmatmul.mubr.msk.bf16.vlgmr.msra.gmra.mxu1 %vm249_vm1, %v586_v56 }
 0x967   :  { %761 = vmatpush1.bf16.msra.mxu1 %v2328_v3  ;;  %784 = vmatprep.mubr.bf16.mxu1 %v2244_v1 }
 0x968   :  { %762 = vmatprep.subr.bf16.mxu1 %v2334_v5 }
 0x96b   :  { %763 = vmatpush1.bf16.msra.mxu1 %v2340_v7 }
 0x96c   :  { %764 = vmatprep.subr.bf16.mxu1 %v2352_v11 }
 0x96f   :  { %765 = vmatpush1.bf16.msra.mxu1 %v2357_v13 }
 0x970   :  { %766 = vmatprep.subr.bf16.mxu1 %v2370_v17 }
 0x973   :  { %767 = vmatpush1.bf16.msra.mxu1 %v2372_v18 }
 0xa26   :  { %v624_v57 = vpop.f32.mrf.mxu1 }
 0xa27   :  { %v631_v28 = vadd.f32 %v624_v57, %v2533_v12 }
 0xa28   :  { %v626_v59 = vpop.f32.mrf.mxu1 }
 0xa29   :  { %v632_v60 = vadd.f32 %v626_v59, %v2524_v58  ;;  %v633_v4 = vmul.f32 0.5, %v631_v28 }
 0xa2a   :  { %v628_v61 = vpop.f32.mrf.mxu1 }
 0xa2b   :  { %v634_v62 = vmul.f32 %v632_v60, %v2418_v33 }
 0xa2c   :  { %v629_v6 = vpop.f32.mrf.mxu1 }
 0xa2d   :  { %2096 = vtanh.f32 %v634_v62 }
 0xa2e   :  { %2098 = vtanh.f32 %v633_v4 }
 0xa3a   :  { %v2097_v8 = vpop.eup %2096 }
 0xa3b   :  { %v638_v9 = vmul.f32 %v2097_v8, %v2418_v33  ;;  %v2099_v14 = vpop.eup %2098 }
 0xa3c   :  { %v637_v15 = vmul.f32 0.5, %v2099_v14 }
 0xa3d   :  { %v640_v10 = vadd.f32 %v638_v9, %v2422_v40 }
 0xa3e   :  { %v639_v16 = vadd.f32 0.5, %v637_v15 }
 0xa3f   :  { %646 = vrot.lane.b32.xlu1 %v640_v10, %s2246_s3 }
 0xa40   :  { %v644_v25 = vmul.f32 %v642_v21, %v639_v16 }
 0xab1   :  { %v647_v19 = vpop.permute.xlu1 %646 }
 0xab2   :  { %v649_v20 = vmul.f32 %v647_v19, %v639_v16 }
 0xab4   :  { %651 = vrot.lane.b32.xlu0 %v649_v20, %s2246_s3 }
 0xb26   :  { %v652_v26 = vpop.permute.xlu0 %651 }
 0xb27   :  { %v654_v27 = vadd.f32 %v652_v26, %v644_v25 }
 0xb29   :  { %2100 = vtanh.f32 %v654_v27  ;;  %v725_v47 = vrot.slane %v654_v27, 6  ;;  %v933_v27 = vld [vmem:[%s2874_s4 + $0x78] sm:$0xff] }
 0xb36   :  { %v2101_v29 = vpop.eup %2100 }
 0xb37   :  { %657 = vrot.lane.b32.xlu1 %v2101_v29, %s2246_s3 }
 0xba9   :  { %v658_v45 = vpop.permute.xlu1 %657 }
 0xbaa   :  { %v660_v63 = vmul.f32 %v658_v45, %v640_v10 }
 0xbac   :  { %661 = vst.msk [vmem:[#allocation2 + $0x8] sm:$0x3] %vm325_vm3, %v660_v63  ;;  %662 = vst.msk [vmem:[#allocation3 + $0x6] sm:$0x3] %vm325_vm3, %v660_v63  ;;  %v663_v30 = vpack.c.bf16 %v660_v63, %v660_v63 }
 0xbae   :  { %1979 = vmatmul.mubr.msk.bf16.vlgmr.msra.gmra.mxu0 %vm249_vm1, %v663_v30 }
 0xbaf   :  { %846 = vmatpush1.bf16.msra.mxu0 %v2328_v3  ;;  %869 = vmatprep.mubr.bf16.mxu0 %v2244_v1 }
 0xbb0   :  { %847 = vmatprep.subr.bf16.mxu0 %v2334_v5 }
 0xbb3   :  { %848 = vmatpush1.bf16.msra.mxu0 %v2340_v7 }
 0xbb4   :  { %849 = vmatprep.subr.bf16.mxu0 %v2352_v11 }
 0xbb7   :  { %850 = vmatpush1.bf16.msra.mxu0 %v2357_v13 }
 0xbb8   :  { %851 = vmatprep.subr.bf16.mxu0 %v2370_v17 }
 0xbbb   :  { %852 = vmatpush1.bf16.msra.mxu0 %v2372_v18 }
 0xbbc   :  { %1057 = vmatprep.subr.mxu0 %v933_v27  ;;  %v940_v27 = vld [vmem:[#allocation6 + $0x20] sm:$0xff] }
 0xc6e   :  { %v701_v32 = vpop.f32.mrf.mxu0 }
 0xc6f   :  { %v710_v13 = vrot.slane %v701_v32, 6 }
 0xc70   :  { %v703_v34 = vpop.f32.mrf.mxu0 }
 0xc71   :  { %v711_v35 = vrot.slane %v703_v34, 6  ;;  %v714_v17 = vadd.f32 %v710_v13, %v2533_v12  ;;  %v932_v34 = vld [vmem:[%s2874_s4 + $0x70] sm:$0xff]  ;;  %v923_v13 = vld [vmem:[%s2874_s4 + $0x28] sm:$0xff] }
 0xc72   :  { %v705_v36 = vpop.f32.mrf.mxu0 }
 0xc73   :  { %v715_v3 = vadd.f32 %v711_v35, %v2524_v58  ;;  %v716_v18 = vmul.f32 0.5, %v714_v17  ;;  %v931_v35 = vld [vmem:[%s2874_s4 + $0x68] sm:$0xff]  ;;  %v930_v36 = vld [vmem:[%s2874_s4 + $0x60] sm:$0xff] }
 0xc74   :  { %v706_v37 = vpop.f32.mrf.mxu0  ;;  %v922_v17 = vld [vmem:[%s2874_s4 + $0x20] sm:$0xff] }
 0xc75   :  { %v717_v38 = vmul.f32 %v715_v3, %v2418_v33  ;;  %v929_v3 = vld [vmem:[%s2874_s4 + $0x58] sm:$0xff]  ;;  %v928_v37 = vld [vmem:[%s2874_s4 + $0x50] sm:$0xff] }
 0xc77   :  { %2102 = vtanh.f32 %v717_v38  ;;  %v927_v38 = vld [vmem:[%s2874_s4 + $0x48] sm:$0xff] }
 0xc78   :  { %2104 = vtanh.f32 %v716_v18  ;;  %v921_v18 = vld [vmem:[%s2874_s4 + $0x18] sm:$0xff] }
 0xc84   :  { %v2103_v5 = vpop.eup %2102 }
 0xc85   :  { %v721_v7 = vmul.f32 %v2103_v5, %v2418_v33  ;;  %v2105_v39 = vpop.eup %2104  ;;  %v926_v5 = vld [vmem:[%s2874_s4 + $0x40] sm:$0xff] }
 0xc86   :  { %v720_v2 = vmul.f32 0.5, %v2105_v39  ;;  %v920_v39 = vld [vmem:[%s2874_s4 + $0x10] sm:$0xff] }
 0xc87   :  { %v723_v11 = vadd.f32 %v721_v7, %v2422_v40  ;;  %v925_v7 = vld [vmem:[%s2874_s4 + $0x38] sm:$0xff] }
 0xc88   :  { %v722_v41 = vadd.f32 0.5, %v720_v2  ;;  %v919_v2 = vld [vmem:[%s2874_s4 + $0x8] sm:$0xff] }
 0xc89   :  { %729 = vrot.lane.b32.xlu0 %v723_v11, %s2246_s3 }
 0xc8a   :  { %v727_v31 = vmul.f32 %v725_v47, %v722_v41 }
 0xcfb   :  { %v730_v42 = vpop.permute.xlu0 %729 }
 0xcfc   :  { %v732_v43 = vmul.f32 %v730_v42, %v722_v41  ;;  %v918_v41 = vld [vmem:[%s2874_s4] sm:$0xff] }
 0xcfd   :  { %v916_v42 = vld [vmem:[#allocation2] sm:$0xff] }
 0xcfe   :  { %734 = vrot.lane.b32.xlu1 %v732_v43, %s2246_s3 }
 0xd70   :  { %v735_v48 = vpop.permute.xlu1 %734 }
 0xd71   :  { %v737_v49 = vadd.f32 %v735_v48, %v727_v31 }
 0xd73   :  { %2106 = vtanh.f32 %v737_v49  ;;  %v810_v20 = vrot.slane %v737_v49, 6 }
 0xd80   :  { %v2107_v50 = vpop.eup %2106 }
 0xd81   :  { %740 = vrot.lane.b32.xlu0 %v2107_v50, %s2246_s3 }
 0xdf3   :  { %v741_v51 = vpop.permute.xlu0 %740 }
 0xdf4   :  { %v743_v52 = vmul.f32 %v741_v51, %v723_v11  ;;  %v924_v11 = vld [vmem:[%s2874_s4 + $0x30] sm:$0xff] }
 0xdf6   :  { %744 = vst.msk [vmem:[#allocation2 + $0x8] sm:$0xc] %vm409_vm4, %v743_v52  ;;  %745 = vst.msk [vmem:[#allocation3 + $0x2] sm:$0xc] %vm409_vm4, %v743_v52  ;;  %v746_v53 = vpack.c.bf16 %v743_v52, %v743_v52 }
 0xdf8   :  { %v748_v54 = vrot.slane %v746_v53, 1 }
 0xdfa   :  { %1980 = vmatmul.mubr.msk.bf16.vlgmr.msra.gmra.mxu1 %vm249_vm1, %v748_v54 }
 0xdfb   :  { %1022 = vmatprep.mubr.f32.mxu1 %v2243_v0 }
 0xeba   :  { %v786_v46 = vpop.f32.mrf.mxu1 }
 0xebb   :  { %v795_v9 = vrot.slane %v786_v46, 4 }
 0xebc   :  { %v788_v55 = vpop.f32.mrf.mxu1 }
 0xebd   :  { %v796_v56 = vrot.slane %v788_v55, 4  ;;  %v799_v10 = vadd.f32 %v795_v9, %v2533_v12  ;;  %v948_v9 = vld [vmem:[#allocation6 + $0x60] sm:$0xff] }
 0xebe   :  { %v790_v57 = vpop.f32.mrf.mxu1 }
 0xebf   :  { %v800_v59 = vadd.f32 %v796_v56, %v2524_v58  ;;  %v801_v28 = vmul.f32 0.5, %v799_v10  ;;  %v947_v10 = vld [vmem:[#allocation6 + $0x58] sm:$0xff] }
 0xec0   :  { %v791_v60 = vpop.f32.mrf.mxu1 }
 0xec1   :  { %v802_v61 = vmul.f32 %v800_v59, %v2418_v33 }
 0xec3   :  { %2108 = vtanh.f32 %v802_v61 }
 0xec4   :  { %2110 = vtanh.f32 %v801_v28  ;;  %v946_v28 = vld [vmem:[#allocation6 + $0x50] sm:$0xff] }
 0xed0   :  { %v2109_v62 = vpop.eup %2108 }
 0xed1   :  { %v806_v6 = vmul.f32 %v2109_v62, %v2418_v33  ;;  %v2111_v4 = vpop.eup %2110  ;;  %v951_v62 = vld [vmem:[#allocation6 + $0x78] sm:$0xff] }
 0xed2   :  { %v805_v14 = vmul.f32 0.5, %v2111_v4  ;;  %974 = vmatprep.subr.mxu1 %v951_v62 }
 0xed3   :  { %v808_v8 = vadd.f32 %v806_v6, %v2422_v40  ;;  %v950_v6 = vld [vmem:[#allocation6 + $0x70] sm:$0xff] }
 0xed4   :  { %v807_v15 = vadd.f32 0.5, %v805_v14  ;;  %975 = vmatpush1.msra.mxu1 %v950_v6 }
 0xed5   :  { %814 = vrot.lane.b32.xlu1 %v808_v8, %s2246_s3 }
 0xed6   :  { %v812_v21 = vmul.f32 %v810_v20, %v807_v15  ;;  %v943_v20 = vld [vmem:[#allocation6 + $0x38] sm:$0xff] }
 0xf47   :  { %v815_v16 = vpop.permute.xlu1 %814 }
 0xf48   :  { %v817_v19 = vmul.f32 %v815_v16, %v807_v15 }
 0xf4a   :  { %819 = vrot.lane.b32.xlu0 %v817_v19, %s2246_s3  ;;  %v944_v19 = vld [vmem:[#allocation6 + $0x40] sm:$0xff] }
 0xfbc   :  { %v820_v25 = vpop.permute.xlu0 %819 }
 0xfbd   :  { %v2568_v26 = vadd.f32 %v820_v25, %v812_v21  ;;  %v942_v21 = vld [vmem:[#allocation6 + $0x30] sm:$0xff]  ;;  %v941_v25 = vld [vmem:[#allocation6 + $0x28] sm:$0xff] }
 0xfbf   :  { %2112 = vtanh.f32 %v2568_v26  ;;  %v895_v4 = vrot.slane %v2568_v26, 6  ;;  %v936_v26 = vld [vmem:[#allocation6] sm:$0xff] }
 0xfcc   :  { %v2113_v29 = vpop.eup %2112 }
 0xfcd   :  { %825 = vrot.lane.b32.xlu1 %v2113_v29, %s2246_s3  ;;  %v939_v29 = vld [vmem:[#allocation6 + $0x18] sm:$0xff] }
0x103f   :  { %v826_v45 = vpop.permute.xlu1 %825 }
0x1040   :  { %v828_v63 = vmul.f32 %v826_v45, %v808_v8  ;;  %v949_v8 = vld [vmem:[#allocation6 + $0x68] sm:$0xff]  ;;  %v938_v45 = vld [vmem:[#allocation6 + $0x10] sm:$0xff] }
0x1041   :  { %976 = vmatprep.subr.mxu1 %v949_v8 }
0x1042   :  { %829 = vst.msk [vmem:[#allocation2 + $0x8] sm:$0x30] %vm495_vm5, %v828_v63  ;;  %830 = vst.msk [vmem:[#allocation3 - $0x2] sm:$0x30] %vm495_vm5, %v828_v63  ;;  %v831_v30 = vpack.c.bf16 %v828_v63, %v828_v63  ;;  %977 = vmatpush1.msra.mxu1 %v948_v9  ;;  %v2637_v63 = vld [vmem:[#allocation8 + $0x34] ss:$8 sps:$4 sm:$0xff]  }
0x1043   :  { %978 = vmatprep.subr.mxu1 %v947_v10 }
0x1044   :  { %v833_v32 = vrot.slane %v831_v30, 2  ;;  %979 = vmatpush1.msra.mxu1 %v946_v28  ;;  %v937_v30 = vld [vmem:[#allocation6 + $0x8] sm:$0xff] }
0x1046   :  { %1981 = vmatmul.mubr.msk.bf16.vlgmr.msra.gmra.mxu0 %vm249_vm1, %v833_v32  ;;  %v2640_v32 = vld [vmem:[#allocation8 + $0x30] ss:$8 sps:$4 sm:$0xff]  }
0x1047   :  { %1058 = vmatpush1.msra.mxu0 %v932_v34  ;;  %1105 = vmatprep.mubr.f32.mxu0 %v2243_v0  ;;  %v2643_v34 = vld [vmem:[#allocation8 + $0x24] ss:$8 sps:$4 sm:$0xff]  }
0x1048   :  { %1059 = vmatprep.subr.mxu0 %v931_v35 }
0x1049   :  { %1060 = vmatpush1.msra.mxu0 %v930_v36  ;;  %v2647_v36 = vld [vmem:[#allocation8 + $0x20] ss:$8 sps:$4 sm:$0xff]  }
0x104a   :  { %1061 = vmatprep.subr.mxu0 %v929_v3  ;;  %v2650_v3 = vld [vmem:[#allocation8 + $0x14] ss:$8 sps:$4 sm:$0xff]  }
0x104b   :  { %1062 = vmatpush1.msra.mxu0 %v928_v37  ;;  %v2653_v37 = vld [vmem:[#allocation8 + $0x10] ss:$8 sps:$4 sm:$0xff]  }
0x104c   :  { %1063 = vmatprep.subr.mxu0 %v927_v38  ;;  %v2656_v38 = vld [vmem:[#allocation8 + $0x4] ss:$8 sps:$4 sm:$0xff]  }
0x104d   :  { %1064 = vmatpush1.msra.mxu0 %v926_v5  ;;  %v2659_v5 = vld [vmem:[#allocation8] ss:$8 sps:$4 sm:$0xff]  }
0x104e   :  { %1065 = vmatprep.subr.mxu0 %v925_v7  ;;  %v1987_v7 = vld [vmem:[%s2879_s9 + $0x2] sm:$0x3] }
0x104f   :  { %1066 = vmatpush1.msra.mxu0 %v924_v11 }
0x1050   :  { %1067 = vmatprep.subr.mxu0 %v923_v13 }
0x1051   :  { %1068 = vmatpush1.msra.mxu0 %v922_v17 }
0x1052   :  { %1069 = vmatprep.subr.mxu0 %v921_v18 }
0x1053   :  { %1070 = vmatpush1.msra.mxu0 %v920_v39  ;;  %v935_v39 = vld [vmem:[#allocation3 + $0x8] sm:$0xff] }
0x1054   :  { %1071 = vmatprep.subr.mxu0 %v919_v2  ;;  %v1986_v2 = vld [vmem:[%s2878_s8 + $0x2] sm:$0x3] }
0x1055   :  { %1072 = vmatpush1.msra.mxu0 %v918_v41  ;;  %v1146_v41 = vpack.c.bf16 %v1986_v2, %v1986_v2 }
0x1056   :  { %1984 = vmatmul.mubr.msk.f32.vlgmr.msra.gmra.mxu0 %vm249_vm1, %v916_v42  ;;  %1274 = vmatprep.subr.bf16.mxu0 %v2637_v63 }
0x1057   :  { %1111 = vmatprep.mubr.f32.mxu0 %v2243_v0  ;;  %1275 = vmatpush1.bf16.msra.mxu0 %v2640_v32 }
0x1058   :  { %1276 = vmatprep.subr.bf16.mxu0 %v2643_v34 }
0x105b   :  { %1277 = vmatpush1.bf16.msra.mxu0 %v2647_v36 }
0x105c   :  { %1278 = vmatprep.subr.bf16.mxu0 %v2650_v3 }
0x105f   :  { %1279 = vmatpush1.bf16.msra.mxu0 %v2653_v37 }
0x1060   :  { %1280 = vmatprep.subr.bf16.mxu0 %v2656_v38 }
0x1063   :  { %1281 = vmatpush1.bf16.msra.mxu0 %v2659_v5 }
0x1064   :  { %1440 = vmatprep.subr.bf16.mxu0 %v2637_v63 }
0x1106   :  { %v871_v43 = vpop.f32.mrf.mxu0 }
0x1107   :  { %v880_v46 = vrot.slane %v871_v43, 2  ;;  %v1118_v43 = vld [vmem:[%s2877_s7] sm:$0x3] }
0x1108   :  { %v873_v47 = vpop.f32.mrf.mxu0 }
0x1109   :  { %v881_v31 = vrot.slane %v873_v47, 2  ;;  %v884_v55 = vadd.f32 %v880_v46, %v2533_v12  ;;  %v945_v12 = vld [vmem:[#allocation6 + $0x48] sm:$0xff]  ;;  %v1123_v47 = vrot.slane %v1118_v43, %v106_v44 }
0x110a   :  { %v875_v48 = vpop.f32.mrf.mxu0  ;;  %980 = vmatprep.subr.mxu1 %v945_v12 }
0x110b   :  { %v885_v49 = vadd.f32 %v881_v31, %v2524_v58  ;;  %v886_v56 = vmul.f32 0.5, %v884_v55  ;;  %981 = vmatpush1.msra.mxu1 %v944_v19 }
0x110c   :  { %v876_v50 = vpop.f32.mrf.mxu0  ;;  %982 = vmatprep.subr.mxu1 %v943_v20 }
0x110d   :  { %v887_v51 = vmul.f32 %v885_v49, %v2418_v33  ;;  %983 = vmatpush1.msra.mxu1 %v942_v21 }
0x110e   :  { %984 = vmatprep.subr.mxu1 %v941_v25 }
0x110f   :  { %2114 = vtanh.f32 %v887_v51  ;;  %985 = vmatpush1.msra.mxu1 %v940_v27 }
0x1110   :  { %2116 = vtanh.f32 %v886_v56  ;;  %986 = vmatprep.subr.mxu1 %v939_v29  ;;  %v1127_v56 = vrot.slane %v1118_v43, %v110_v24 }
0x1111   :  { %987 = vmatpush1.msra.mxu1 %v938_v45 }
0x1112   :  { %988 = vmatprep.subr.mxu1 %v937_v30 }
0x1113   :  { %989 = vmatpush1.msra.mxu1 %v936_v26 }
0x1114   :  { %1198 = vmatprep.subr.bf16.mxu1 %v2637_v63 }
0x1116   :  { %v1107_v42 = vpop.f32.mrf.mxu0 }
0x1118   :  { %v1109_v31 = vpop.f32.mrf.mxu0 }
0x111c   :  { %v2115_v52 = vpop.eup %2114 }
0x111d   :  { %v891_v53 = vmul.f32 %v2115_v52, %v2418_v33  ;;  %v2117_v57 = vpop.eup %2116 }
0x111e   :  { %v890_v58 = vmul.f32 0.5, %v2117_v57 }
0x111f   :  { %v2630_v54 = vadd.f32 %v891_v53, %v2422_v40 }
0x1120   :  { %v892_v59 = vadd.f32 0.5, %v890_v58 }
0x1121   :  { %899 = vrot.lane.b32.xlu0 %v2630_v54, %s2246_s3 }
0x1122   :  { %v897_v14 = vmul.f32 %v895_v4, %v892_v59 }
0x1193   :  { %v900_v60 = vpop.permute.xlu0 %899 }
0x1194   :  { %v902_v61 = vmul.f32 %v900_v60, %v892_v59 }
0x1196   :  { %904 = vrot.lane.b32.xlu1 %v902_v61, %s2246_s3 }
0x1208   :  { %v905_v15 = vpop.permute.xlu1 %904 }
0x1209   :  { %v907_v16 = vadd.f32 %v905_v15, %v897_v14 }
0x120b   :  { %2118 = vtanh.f32 %v907_v16 }
0x1218   :  { %v2119_v35 = vpop.eup %2118 }
0x1219   :  { %910 = vrot.lane.b32.xlu0 %v2119_v35, %s2246_s3 }
0x121d   :  { %1242 = vrot.lane.b32.xlu0 %v1987_v7, %s2246_s3 }
0x128b   :  { %v911_v11 = vpop.permute.xlu0 %910 }
0x128c   :  { %v913_v13 = vmul.f32 %v911_v11, %v2630_v54 }
0x128e   :  { %914 = vst.msk [vmem:[#allocation2 + $0x8] sm:$0xc0] %vm581_vm6, %v913_v13  ;;  %915 = vst.msk [vmem:[#allocation3 - $0x6] sm:$0xc0] %vm581_vm6, %v913_v13 }
0x128f   :  { %v1243_v21 = vpop.permute.xlu0 %1242 }
0x1295   :  { %v934_v17 = vld [vmem:[#allocation3] sm:$0xff]  ;;  %v917_v18 = vld [vmem:[#allocation2 + $0x8] sm:$0xff] }
0x1296   :  { %1982 = vmatmul.mubr.msk.f32.vlgmr.msra.gmra.mxu1 %vm249_vm1, %v934_v17  ;;  %1985 = vmatmul.mubr.msk.f32.gmra.mxu0 %vm249_vm1, %v917_v18 }
0x1297   :  { %1199 = vmatpush1.bf16.msra.mxu1 %v2640_v32  ;;  %1028 = vmatprep.mubr.f32.mxu1 %v2243_v0 }
0x1298   :  { %1200 = vmatprep.subr.bf16.mxu1 %v2643_v34  ;;  %1298 = vmatprep.mubr.bf16.mxu0 %v2244_v1 }
0x129a   :  { %1983 = vmatmul.mubr.msk.f32.gmra.mxu1 %vm249_vm1, %v935_v39 }
0x129b   :  { %1201 = vmatpush1.bf16.msra.mxu1 %v2647_v36  ;;  %1222 = vmatprep.mubr.bf16.mxu1 %v2244_v1 }
0x129c   :  { %1202 = vmatprep.subr.bf16.mxu1 %v2650_v3 }
0x129f   :  { %1203 = vmatpush1.bf16.msra.mxu1 %v2653_v37 }
0x12a0   :  { %1204 = vmatprep.subr.bf16.mxu1 %v2656_v38 }
0x12a3   :  { %1205 = vmatpush1.bf16.msra.mxu1 %v2659_v5 }
0x12a4   :  { %1357 = vmatprep.subr.bf16.mxu1 %v2637_v63 }
0x12a6   :  { %1996 = vmatmul.mubr.msk.bf16.vlgmr.msra.gmra.mxu1 %vm249_vm1, %v1146_v41 }
0x12a7   :  { %1358 = vmatpush1.bf16.msra.mxu1 %v2640_v32  ;;  %1381 = vmatprep.mubr.bf16.mxu1 %v2244_v1 }
0x12a8   :  { %1359 = vmatprep.subr.bf16.mxu1 %v2643_v34 }
0x12ab   :  { %1360 = vmatpush1.bf16.msra.mxu1 %v2647_v36 }
0x12ac   :  { %1361 = vmatprep.subr.bf16.mxu1 %v2650_v3 }
0x12af   :  { %1362 = vmatpush1.bf16.msra.mxu1 %v2653_v37 }
0x12b0   :  { %1363 = vmatprep.subr.bf16.mxu1 %v2656_v38 }
0x12b3   :  { %1364 = vmatpush1.bf16.msra.mxu1 %v2659_v5 }
0x12b4   :  { %1523 = vmatprep.subr.bf16.mxu1 %v2637_v63 }
0x1356   :  { %v1024_v48 = vpop.f32.mrf.mxu1  ;;  %v1113_v50 = vpop.f32.mrf.mxu0 }
0x1357   :  { %v1108_v49 = vadd.f32 %v1107_v42, %v1024_v48 }
0x1358   :  { %v1026_v51 = vpop.f32.mrf.mxu1  ;;  %v1115_v46 = vpop.f32.mrf.mxu0 }
0x1359   :  { %v2703_v52 = vadd.f32 %v1123_v47, %v1108_v49  ;;  %v1110_v44 = vadd.f32 %v1109_v31, %v1026_v51 }
0x135a   :  { %v1030_v53 = vpop.f32.mrf.mxu1 }
0x135b   :  { %v1114_v54 = vadd.f32 %v1113_v50, %v1030_v53  ;;  %v2711_v61 = vadd.f32 %v1127_v56, %v1110_v44 }
0x135c   :  { %v1032_v55 = vpop.f32.mrf.mxu1 }
0x135d   :  { %v2707_v57 = vadd.f32 %v1123_v47, %v1114_v54  ;;  %v1116_v58 = vadd.f32 %v1115_v46, %v1032_v55 }
0x135f   :  { %v2709_v59 = vadd.f32 %v1127_v56, %v1116_v58 }
0x1366   :  { %v1224_v60 = vpop.f32.mrf.mxu1 }
0x1367   :  { %v1231_v12 = vadd.f32 %v1224_v60, %v2703_v52 }
0x1368   :  { %v1226_v62 = vpop.f32.mrf.mxu1 }
0x1369   :  { %v1232_v6 = vadd.f32 %v1226_v62, %v2711_v61  ;;  %v1233_v4 = vmul.f32 0.5, %v1231_v12 }
0x136a   :  { %v1228_v8 = vpop.f32.mrf.mxu1 }
0x136b   :  { %v1234_v9 = vmul.f32 %v1232_v6, %v2418_v33 }
0x136c   :  { %v1229_v10 = vpop.f32.mrf.mxu1 }
0x136d   :  { %2120 = vtanh.f32 %v1234_v9 }
0x136e   :  { %2122 = vtanh.f32 %v1233_v4 }
0x137a   :  { %v2121_v28 = vpop.eup %2120 }
0x137b   :  { %v1238_v22 = vmul.f32 %v2121_v28, %v2418_v33  ;;  %v2123_v14 = vpop.eup %2122 }
0x137c   :  { %v1237_v15 = vmul.f32 0.5, %v2123_v14 }
0x137d   :  { %v1240_v24 = vadd.f32 %v1238_v22, %v2422_v40 }
0x137e   :  { %v1239_v16 = vadd.f32 0.5, %v1237_v15 }
0x137f   :  { %1247 = vrot.lane.b32.xlu1 %v1240_v24, %s2246_s3 }
0x1380   :  { %v1245_v25 = vmul.f32 %v1243_v21, %v1239_v16 }
0x13f1   :  { %v1248_v19 = vpop.permute.xlu1 %1247 }
0x13f2   :  { %v1250_v20 = vmul.f32 %v1248_v19, %v1239_v16 }
0x13f4   :  { %1252 = vrot.lane.b32.xlu1 %v1250_v20, %s2246_s3 }
0x1466   :  { %v1253_v27 = vpop.permute.xlu1 %1252 }
0x1467   :  { %v1255_v29 = vadd.f32 %v1253_v27, %v1245_v25 }
0x1469   :  { %2124 = vtanh.f32 %v1255_v29  ;;  %v1324_v46 = vrot.slane %v1255_v29, 6 }
0x1476   :  { %v2125_v45 = vpop.eup %2124 }
0x1477   :  { %1258 = vrot.lane.b32.xlu0 %v2125_v45, %s2246_s3 }
0x14e9   :  { %v1259_v30 = vpop.permute.xlu0 %1258 }
0x14ea   :  { %v1261_v26 = vmul.f32 %v1259_v30, %v1240_v24 }
0x14ec   :  { %v1262_v35 = vpack.c.bf16 %v1261_v26, %v1261_v26 }
0x14ee   :  { %1997 = vmatmul.mubr.msk.bf16.vlgmr.msra.gmra.mxu0 %vm249_vm1, %v1262_v35 }
0x14ef   :  { %1441 = vmatpush1.bf16.msra.mxu0 %v2640_v32  ;;  %1464 = vmatprep.mubr.bf16.mxu0 %v2244_v1 }
0x14f0   :  { %1442 = vmatprep.subr.bf16.mxu0 %v2643_v34 }
0x14f3   :  { %1443 = vmatpush1.bf16.msra.mxu0 %v2647_v36 }
0x14f4   :  { %1444 = vmatprep.subr.bf16.mxu0 %v2650_v3 }
0x14f7   :  { %1445 = vmatpush1.bf16.msra.mxu0 %v2653_v37 }
0x14f8   :  { %1446 = vmatprep.subr.bf16.mxu0 %v2656_v38 }
0x14fb   :  { %1447 = vmatpush1.bf16.msra.mxu0 %v2659_v5 }
0x14fc   :  { %1598 = vmatprep.subr.bf16.mxu0 %v2637_v63 }
0x15ae   :  { %v1300_v7 = vpop.f32.mrf.mxu0 }
0x15af   :  { %v1309_v47 = vrot.slane %v1300_v7, 6 }
0x15b0   :  { %v1302_v11 = vpop.f32.mrf.mxu0 }
0x15b1   :  { %v1310_v13 = vrot.slane %v1302_v11, 6  ;;  %v1313_v31 = vadd.f32 %v1309_v47, %v2703_v52 }
0x15b2   :  { %v1304_v17 = vpop.f32.mrf.mxu0 }
0x15b3   :  { %v1314_v18 = vadd.f32 %v1310_v13, %v2711_v61  ;;  %v1315_v48 = vmul.f32 0.5, %v1313_v31 }
0x15b4   :  { %v1305_v39 = vpop.f32.mrf.mxu0 }
0x15b5   :  { %v1316_v2 = vmul.f32 %v1314_v18, %v2418_v33 }
0x15b7   :  { %2126 = vtanh.f32 %v1316_v2 }
0x15b8   :  { %2128 = vtanh.f32 %v1315_v48 }
0x15c4   :  { %v2127_v41 = vpop.eup %2126 }
0x15c5   :  { %v1320_v42 = vmul.f32 %v2127_v41, %v2418_v33  ;;  %v2129_v49 = vpop.eup %2128 }
0x15c6   :  { %v1319_v50 = vmul.f32 0.5, %v2129_v49 }
0x15c7   :  { %v1322_v43 = vadd.f32 %v1320_v42, %v2422_v40 }
0x15c8   :  { %v1321_v51 = vadd.f32 0.5, %v1319_v50 }
0x15c9   :  { %1328 = vrot.lane.b32.xlu1 %v1322_v43, %s2246_s3 }
0x15ca   :  { %v1326_v55 = vmul.f32 %v1324_v46, %v1321_v51 }
0x163b   :  { %v1329_v53 = vpop.permute.xlu1 %1328 }
0x163c   :  { %v1331_v54 = vmul.f32 %v1329_v53, %v1321_v51 }
0x163e   :  { %1333 = vrot.lane.b32.xlu0 %v1331_v54, %s2246_s3 }
0x16b0   :  { %v1334_v56 = vpop.permute.xlu0 %1333 }
0x16b1   :  { %v1336_v58 = vadd.f32 %v1334_v56, %v1326_v55 }
0x16b3   :  { %2130 = vtanh.f32 %v1336_v58  ;;  %v1407_v26 = vrot.slane %v1336_v58, 6 }
0x16c0   :  { %v2131_v44 = vpop.eup %2130 }
0x16c1   :  { %1339 = vrot.lane.b32.xlu1 %v2131_v44, %s2246_s3 }
0x1733   :  { %v1340_v60 = vpop.permute.xlu1 %1339 }
0x1734   :  { %v1342_v62 = vmul.f32 %v1340_v60, %v1322_v43 }
0x1736   :  { %v1343_v6 = vpack.c.bf16 %v1342_v62, %v1342_v62 }
0x1738   :  { %v1345_v8 = vrot.slane %v1343_v6, 1 }
0x173a   :  { %1998 = vmatmul.mubr.msk.bf16.vlgmr.msra.gmra.mxu1 %vm249_vm1, %v1345_v8 }
0x173b   :  { %1524 = vmatpush1.bf16.msra.mxu1 %v2640_v32  ;;  %1547 = vmatprep.mubr.bf16.mxu1 %v2244_v1 }
0x173c   :  { %1525 = vmatprep.subr.bf16.mxu1 %v2643_v34 }
0x173f   :  { %1526 = vmatpush1.bf16.msra.mxu1 %v2647_v36 }
0x1740   :  { %1527 = vmatprep.subr.bf16.mxu1 %v2650_v3 }
0x1743   :  { %1528 = vmatpush1.bf16.msra.mxu1 %v2653_v37 }
0x1744   :  { %1529 = vmatprep.subr.bf16.mxu1 %v2656_v38 }
0x1747   :  { %1530 = vmatpush1.bf16.msra.mxu1 %v2659_v5 }
0x1748   :  { %1681 = vmatprep.subr.bf16.mxu1 %v2637_v63 }
0x17fa   :  { %v1383_v9 = vpop.f32.mrf.mxu1 }
0x17fb   :  { %v1392_v19 = vrot.slane %v1383_v9, 4 }
0x17fc   :  { %v1385_v10 = vpop.f32.mrf.mxu1 }
0x17fd   :  { %v1393_v28 = vrot.slane %v1385_v10, 4  ;;  %v1396_v20 = vadd.f32 %v1392_v19, %v2703_v52 }
0x17fe   :  { %v1387_v22 = vpop.f32.mrf.mxu1 }
0x17ff   :  { %v1397_v24 = vadd.f32 %v1393_v28, %v2711_v61  ;;  %v1398_v21 = vmul.f32 0.5, %v1396_v20 }
0x1800   :  { %v1388_v12 = vpop.f32.mrf.mxu1 }
0x1801   :  { %v1399_v4 = vmul.f32 %v1397_v24, %v2418_v33 }
0x1803   :  { %2132 = vtanh.f32 %v1399_v4 }
0x1804   :  { %2134 = vtanh.f32 %v1398_v21 }
0x1810   :  { %v2133_v14 = vpop.eup %2132 }
0x1811   :  { %v1403_v15 = vmul.f32 %v2133_v14, %v2418_v33  ;;  %v2135_v25 = vpop.eup %2134 }
0x1812   :  { %v1402_v27 = vmul.f32 0.5, %v2135_v25 }
0x1813   :  { %v1405_v16 = vadd.f32 %v1403_v15, %v2422_v40 }
0x1814   :  { %v1404_v29 = vadd.f32 0.5, %v1402_v27 }
0x1815   :  { %1411 = vrot.lane.b32.xlu0 %v1405_v16, %s2246_s3 }
0x1816   :  { %v1409_v35 = vmul.f32 %v1407_v26, %v1404_v29 }
0x1887   :  { %v1412_v45 = vpop.permute.xlu0 %1411 }
0x1888   :  { %v1414_v30 = vmul.f32 %v1412_v45, %v1404_v29 }
0x188a   :  { %1416 = vrot.lane.b32.xlu1 %v1414_v30, %s2246_s3 }
0x18fc   :  { %v1417_v7 = vpop.permute.xlu1 %1416 }
0x18fd   :  { %v1419_v11 = vadd.f32 %v1417_v7, %v1409_v35 }
0x18ff   :  { %2136 = vtanh.f32 %v1419_v11  ;;  %v1490_v60 = vrot.slane %v1419_v11, 6 }
0x190c   :  { %v2137_v13 = vpop.eup %2136 }
0x190d   :  { %1422 = vrot.lane.b32.xlu0 %v2137_v13, %s2246_s3 }
0x197f   :  { %v1423_v17 = vpop.permute.xlu0 %1422 }
0x1980   :  { %v1425_v18 = vmul.f32 %v1423_v17, %v1405_v16 }
0x1982   :  { %v1426_v39 = vpack.c.bf16 %v1425_v18, %v1425_v18 }
0x1984   :  { %v1428_v2 = vrot.slane %v1426_v39, 2 }
0x1986   :  { %1999 = vmatmul.mubr.msk.bf16.vlgmr.msra.gmra.mxu0 %vm249_vm1, %v1428_v2 }
0x1987   :  { %1599 = vmatpush1.bf16.msra.mxu0 %v2640_v32  ;;  %1622 = vmatprep.mubr.bf16.mxu0 %v2244_v1 }
0x1988   :  { %1600 = vmatprep.subr.bf16.mxu0 %v2643_v34 }
0x198b   :  { %1601 = vmatpush1.bf16.msra.mxu0 %v2647_v36 }
0x198c   :  { %1602 = vmatprep.subr.bf16.mxu0 %v2650_v3 }
0x198f   :  { %1603 = vmatpush1.bf16.msra.mxu0 %v2653_v37 }
0x1990   :  { %1604 = vmatprep.subr.bf16.mxu0 %v2656_v38 }
0x1993   :  { %1605 = vmatpush1.bf16.msra.mxu0 %v2659_v5 }
0x1994   :  { %1764 = vmatprep.subr.bf16.mxu0 %v2637_v63 }
0x1a46   :  { %v1466_v41 = vpop.f32.mrf.mxu0 }
0x1a47   :  { %v1475_v54 = vrot.slane %v1466_v41, 2 }
0x1a48   :  { %v1468_v42 = vpop.f32.mrf.mxu0 }
0x1a49   :  { %v1476_v43 = vrot.slane %v1468_v42, 2  ;;  %v1479_v63 = vadd.f32 %v1475_v54, %v2703_v52 }
0x1a4a   :  { %v1470_v47 = vpop.f32.mrf.mxu0 }
0x1a4b   :  { %v1480_v31 = vadd.f32 %v1476_v43, %v2711_v61  ;;  %v1481_v46 = vmul.f32 0.5, %v1479_v63 }
0x1a4c   :  { %v1471_v48 = vpop.f32.mrf.mxu0 }
0x1a4d   :  { %v1482_v49 = vmul.f32 %v1480_v31, %v2418_v33 }
0x1a4f   :  { %2138 = vtanh.f32 %v1482_v49 }
0x1a50   :  { %2140 = vtanh.f32 %v1481_v46 }
0x1a5c   :  { %v2139_v50 = vpop.eup %2138 }
0x1a5d   :  { %v1486_v51 = vmul.f32 %v2139_v50, %v2418_v33  ;;  %v2141_v55 = vpop.eup %2140 }
0x1a5e   :  { %v1485_v56 = vmul.f32 0.5, %v2141_v55 }
0x1a5f   :  { %v1488_v53 = vadd.f32 %v1486_v51, %v2422_v40 }
0x1a60   :  { %v1487_v58 = vadd.f32 0.5, %v1485_v56 }
0x1a61   :  { %1494 = vrot.lane.b32.xlu1 %v1488_v53, %s2246_s3 }
0x1a62   :  { %v1492_v62 = vmul.f32 %v1490_v60, %v1487_v58 }
0x1ad3   :  { %v1495_v61 = vpop.permute.xlu1 %1494 }
0x1ad4   :  { %v1497_v44 = vmul.f32 %v1495_v61, %v1487_v58 }
0x1ad6   :  { %1499 = vrot.lane.b32.xlu0 %v1497_v44, %s2246_s3 }
0x1b48   :  { %v1500_v6 = vpop.permute.xlu0 %1499 }
0x1b49   :  { %v1502_v8 = vadd.f32 %v1500_v6, %v1492_v62 }
0x1b4b   :  { %2142 = vtanh.f32 %v1502_v8  ;;  %v1567_v7 = vrot.slane %v1502_v8, 6 }
0x1b58   :  { %v2143_v9 = vpop.eup %2142 }
0x1b59   :  { %1505 = vrot.lane.b32.xlu1 %v2143_v9, %s2246_s3 }
0x1bcb   :  { %v1506_v10 = vpop.permute.xlu1 %1505 }
0x1bcc   :  { %v1508_v28 = vmul.f32 %v1506_v10, %v1488_v53 }
0x1bce   :  { %v1509_v52 = vpack.c.bf16 %v1508_v28, %v1508_v28 }
0x1bd0   :  { %v1511_v22 = vrot.slane %v1509_v52, 3 }
0x1bd2   :  { %2000 = vmatmul.mubr.msk.bf16.vlgmr.msra.gmra.mxu1 %vm249_vm1, %v1511_v22 }
0x1bd3   :  { %1682 = vmatpush1.bf16.msra.mxu1 %v2640_v32  ;;  %1705 = vmatprep.mubr.bf16.mxu1 %v2244_v1 }
0x1bd4   :  { %1683 = vmatprep.subr.bf16.mxu1 %v2643_v34 }
0x1bd7   :  { %1684 = vmatpush1.bf16.msra.mxu1 %v2647_v36 }
0x1bd8   :  { %1685 = vmatprep.subr.bf16.mxu1 %v2650_v3 }
0x1bdb   :  { %1686 = vmatpush1.bf16.msra.mxu1 %v2653_v37 }
0x1bdc   :  { %1687 = vmatprep.subr.bf16.mxu1 %v2656_v38 }
0x1bdf   :  { %1688 = vmatpush1.bf16.msra.mxu1 %v2659_v5 }
0x1be0   :  { %2015 = vmatprep.subr.mxu1 %v2243_v0 }
0x1c92   :  { %v1549_v24 = vpop.f32.mrf.mxu1 }
0x1c93   :  { %v1556_v25 = vadd.f32 %v1549_v24, %v2707_v57 }
0x1c94   :  { %v1551_v12 = vpop.f32.mrf.mxu1 }
0x1c95   :  { %v1557_v4 = vadd.f32 %v1551_v12, %v2709_v59  ;;  %v1558_v27 = vmul.f32 0.5, %v1556_v25 }
0x1c96   :  { %v1553_v14 = vpop.f32.mrf.mxu1 }
0x1c97   :  { %v1559_v15 = vmul.f32 %v1557_v4, %v2418_v33 }
0x1c98   :  { %v1554_v16 = vpop.f32.mrf.mxu1 }
0x1c99   :  { %2144 = vtanh.f32 %v1559_v15 }
0x1c9a   :  { %2146 = vtanh.f32 %v1558_v27 }
0x1ca6   :  { %v2145_v19 = vpop.eup %2144 }
0x1ca7   :  { %v1563_v20 = vmul.f32 %v2145_v19, %v2418_v33  ;;  %v2147_v29 = vpop.eup %2146 }
0x1ca8   :  { %v1562_v45 = vmul.f32 0.5, %v2147_v29 }
0x1ca9   :  { %v1565_v21 = vadd.f32 %v1563_v20, %v2422_v40 }
0x1caa   :  { %v1564_v30 = vadd.f32 0.5, %v1562_v45 }
0x1cab   :  { %1571 = vrot.lane.b32.xlu0 %v1565_v21, %s2246_s3 }
0x1cac   :  { %v1569_v11 = vmul.f32 %v1567_v7, %v1564_v30 }
0x1d1d   :  { %v1572_v26 = vpop.permute.xlu0 %1571 }
0x1d1e   :  { %v1574_v35 = vmul.f32 %v1572_v26, %v1564_v30 }
0x1d20   :  { %1576 = vrot.lane.b32.xlu1 %v1574_v35, %s2246_s3 }
0x1d92   :  { %v1577_v13 = vpop.permute.xlu1 %1576 }
0x1d93   :  { %v1579_v17 = vadd.f32 %v1577_v13, %v1569_v11 }
0x1d95   :  { %2148 = vtanh.f32 %v1579_v17  ;;  %v1648_v63 = vrot.slane %v1579_v17, 6 }
0x1da2   :  { %v2149_v18 = vpop.eup %2148 }
0x1da3   :  { %1582 = vrot.lane.b32.xlu0 %v2149_v18, %s2246_s3 }
0x1e15   :  { %v1583_v39 = vpop.permute.xlu0 %1582 }
0x1e16   :  { %v1585_v2 = vmul.f32 %v1583_v39, %v1565_v21 }
0x1e18   :  { %v1586_v41 = vpack.c.bf16 %v1585_v2, %v1585_v2 }
0x1e1a   :  { %2001 = vmatmul.mubr.msk.bf16.vlgmr.msra.gmra.mxu0 %vm249_vm1, %v1586_v41 }
0x1e1b   :  { %1765 = vmatpush1.bf16.msra.mxu0 %v2640_v32  ;;  %1788 = vmatprep.mubr.bf16.mxu0 %v2244_v1 }
0x1e1c   :  { %1766 = vmatprep.subr.bf16.mxu0 %v2643_v34 }
0x1e1f   :  { %1767 = vmatpush1.bf16.msra.mxu0 %v2647_v36 }
0x1e20   :  { %1768 = vmatprep.subr.bf16.mxu0 %v2650_v3 }
0x1e23   :  { %1769 = vmatpush1.bf16.msra.mxu0 %v2653_v37 }
0x1e24   :  { %1770 = vmatprep.subr.bf16.mxu0 %v2656_v38 }
0x1e27   :  { %1771 = vmatpush1.bf16.msra.mxu0 %v2659_v5 }
0x1eda   :  { %v1624_v42 = vpop.f32.mrf.mxu0 }
0x1edb   :  { %v1633_v37 = vrot.slane %v1624_v42, 6 }
0x1edc   :  { %v1626_v43 = vpop.f32.mrf.mxu0 }
0x1edd   :  { %v1634_v47 = vrot.slane %v1626_v43, 6  ;;  %v1637_v38 = vadd.f32 %v1633_v37, %v2707_v57 }
0x1ede   :  { %v1628_v31 = vpop.f32.mrf.mxu0 }
0x1edf   :  { %v1638_v32 = vadd.f32 %v1634_v47, %v2709_v59  ;;  %v1639_v5 = vmul.f32 0.5, %v1637_v38 }
0x1ee0   :  { %v1629_v48 = vpop.f32.mrf.mxu0 }
0x1ee1   :  { %v1640_v1 = vmul.f32 %v1638_v32, %v2418_v33 }
0x1ee3   :  { %2150 = vtanh.f32 %v1640_v1 }
0x1ee4   :  { %2152 = vtanh.f32 %v1639_v5 }
0x1ef0   :  { %v2151_v34 = vpop.eup %2150 }
0x1ef1   :  { %v1644_v36 = vmul.f32 %v2151_v34, %v2418_v33  ;;  %v2153_v49 = vpop.eup %2152 }
0x1ef2   :  { %v1643_v50 = vmul.f32 0.5, %v2153_v49 }
0x1ef3   :  { %v1646_v3 = vadd.f32 %v1644_v36, %v2422_v40 }
0x1ef4   :  { %v1645_v51 = vadd.f32 0.5, %v1643_v50 }
0x1ef5   :  { %1652 = vrot.lane.b32.xlu1 %v1646_v3, %s2246_s3 }
0x1ef6   :  { %v1650_v46 = vmul.f32 %v1648_v63, %v1645_v51  ;;  %v1855_v63 = vld [vmem:[%s2880_s10 + $0x18] sm:$0xff] }
0x1f67   :  { %v1653_v53 = vpop.permute.xlu1 %1652 }
0x1f68   :  { %v1655_v54 = vmul.f32 %v1653_v53, %v1645_v51  ;;  %v1857_v53 = vld [vmem:[%s2880_s10 + $0x28] sm:$0xff] }
0x1f6a   :  { %1657 = vrot.lane.b32.xlu0 %v1655_v54, %s2246_s3  ;;  %v1856_v54 = vld [vmem:[%s2880_s10 + $0x20] sm:$0xff] }
0x1fdc   :  { %v1658_v55 = vpop.permute.xlu0 %1657 }
0x1fdd   :  { %v1660_v56 = vadd.f32 %v1658_v55, %v1650_v46  ;;  %v1854_v55 = vld [vmem:[%s2880_s10 + $0x10] sm:$0xff] }
0x1fdf   :  { %2154 = vtanh.f32 %v1660_v56  ;;  %v1731_v29 = vrot.slane %v1660_v56, 6  ;;  %v1853_v56 = vld [vmem:[%s2880_s10 + $0x8] sm:$0xff] }
0x1fec   :  { %v2155_v58 = vpop.eup %2154 }
0x1fed   :  { %1663 = vrot.lane.b32.xlu1 %v2155_v58, %s2246_s3  ;;  %v1852_v58 = vld [vmem:[%s2880_s10] sm:$0xff] }
0x205f   :  { %v1664_v61 = vpop.permute.xlu1 %1663 }
0x2060   :  { %v1666_v44 = vmul.f32 %v1664_v61, %v1646_v3 }
0x2062   :  { %v1667_v60 = vpack.c.bf16 %v1666_v44, %v1666_v44 }
0x2064   :  { %v1669_v62 = vrot.slane %v1667_v60, 1 }
0x2066   :  { %2002 = vmatmul.mubr.msk.bf16.vlgmr.msra.gmra.mxu1 %vm249_vm1, %v1669_v62 }
0x2067   :  { %2031 = vmatprep.mubr.msk.f32.mxu1 %vm2247_vm7, %v2243_v0 }
0x2126   :  { %v1707_v6 = vpop.f32.mrf.mxu1 }
0x2127   :  { %v1716_v14 = vrot.slane %v1707_v6, 4 }
0x2128   :  { %v1709_v8 = vpop.f32.mrf.mxu1 }
0x2129   :  { %v1717_v9 = vrot.slane %v1709_v8, 4  ;;  %v1720_v15 = vadd.f32 %v1716_v14, %v2707_v57 }
0x212a   :  { %v1711_v10 = vpop.f32.mrf.mxu1 }
0x212b   :  { %v1721_v28 = vadd.f32 %v1717_v9, %v2709_v59  ;;  %v1722_v16 = vmul.f32 0.5, %v1720_v15 }
0x212c   :  { %v1712_v52 = vpop.f32.mrf.mxu1 }
0x212d   :  { %v1723_v22 = vmul.f32 %v1721_v28, %v2418_v33 }
0x212f   :  { %2156 = vtanh.f32 %v1723_v22 }
0x2130   :  { %2158 = vtanh.f32 %v1722_v16 }
0x213c   :  { %v2157_v24 = vpop.eup %2156 }
0x213d   :  { %v1727_v12 = vmul.f32 %v2157_v24, %v2418_v33  ;;  %v2159_v19 = vpop.eup %2158 }
0x213e   :  { %v1726_v20 = vmul.f32 0.5, %v2159_v19 }
0x213f   :  { %v1729_v4 = vadd.f32 %v1727_v12, %v2422_v40 }
0x2140   :  { %v1728_v21 = vadd.f32 0.5, %v1726_v20 }
0x2141   :  { %1735 = vrot.lane.b32.xlu0 %v1729_v4, %s2246_s3 }
0x2142   :  { %v1733_v45 = vmul.f32 %v1731_v29, %v1728_v21 }
0x21b3   :  { %v1736_v25 = vpop.permute.xlu0 %1735 }
0x21b4   :  { %v1738_v27 = vmul.f32 %v1736_v25, %v1728_v21 }
0x21b6   :  { %1740 = vrot.lane.b32.xlu1 %v1738_v27, %s2246_s3 }
0x2228   :  { %v1741_v30 = vpop.permute.xlu1 %1740 }
0x2229   :  { %v1743_v26 = vadd.f32 %v1741_v30, %v1733_v45 }
0x222b   :  { %2160 = vtanh.f32 %v1743_v26  ;;  %v1814_v49 = vrot.slane %v1743_v26, 6 }
0x2238   :  { %v2161_v35 = vpop.eup %2160 }
0x2239   :  { %1746 = vrot.lane.b32.xlu0 %v2161_v35, %s2246_s3 }
0x22ab   :  { %v1747_v7 = vpop.permute.xlu0 %1746 }
0x22ac   :  { %v1749_v11 = vmul.f32 %v1747_v7, %v1729_v4 }
0x22ae   :  { %v1750_v13 = vpack.c.bf16 %v1749_v11, %v1749_v11 }
0x22b0   :  { %v1752_v17 = vrot.slane %v1750_v13, 2 }
0x22b2   :  { %2003 = vmatmul.mubr.msk.bf16.vlgmr.msra.gmra.mxu0 %vm249_vm1, %v1752_v17 }
0x2372   :  { %v1790_v18 = vpop.f32.mrf.mxu0 }
0x2373   :  { %v1799_v1 = vrot.slane %v1790_v18, 2 }
0x2374   :  { %v1792_v39 = vpop.f32.mrf.mxu0 }
0x2375   :  { %v1800_v2 = vrot.slane %v1792_v39, 2  ;;  %v1803_v34 = vadd.f32 %v1799_v1, %v2707_v57  ;;  %v1858_v57 = vld [vmem:[%s2880_s10 + $0x30] sm:$0xff] }
0x2376   :  { %v1794_v41 = vpop.f32.mrf.mxu0 }
0x2377   :  { %v1804_v42 = vadd.f32 %v1800_v2, %v2709_v59  ;;  %v1805_v36 = vmul.f32 0.5, %v1803_v34 }
0x2378   :  { %v1795_v43 = vpop.f32.mrf.mxu0 }
0x2379   :  { %v1806_v47 = vmul.f32 %v1804_v42, %v2418_v33 }
0x237b   :  { %2162 = vtanh.f32 %v1806_v47 }
0x237c   :  { %2164 = vtanh.f32 %v1805_v36 }
0x2388   :  { %v2163_v31 = vpop.eup %2162 }
0x2389   :  { %v1810_v32 = vmul.f32 %v2163_v31, %v2418_v33  ;;  %v2165_v3 = vpop.eup %2164 }
0x238a   :  { %v1809_v37 = vmul.f32 0.5, %v2165_v3 }
0x238b   :  { %v1812_v48 = vadd.f32 %v1810_v32, %v2422_v40  ;;  %v1859_v40 = vld [vmem:[%s2880_s10 + $0x38] sm:$0xff] }
0x238c   :  { %v1811_v38 = vadd.f32 0.5, %v1809_v37  ;;  %2016 = vmatpush3.msra.mxu1 %v1859_v40 }
0x238d   :  { %1818 = vrot.lane.b32.xlu1 %v1812_v48, %s2246_s3  ;;  %2017 = vmatprep.subr.mxu1 %v2243_v0 }
0x238e   :  { %v1816_v50 = vmul.f32 %v1814_v49, %v1811_v38  ;;  %2018 = vmatpush3.msra.mxu1 %v1858_v57 }
0x238f   :  { %2019 = vmatprep.subr.mxu1 %v2243_v0 }
0x2390   :  { %2020 = vmatpush3.msra.mxu1 %v1857_v53 }
0x2391   :  { %2021 = vmatprep.subr.mxu1 %v2243_v0 }
0x2392   :  { %2022 = vmatpush3.msra.mxu1 %v1856_v54 }
0x2393   :  { %2023 = vmatprep.subr.mxu1 %v2243_v0 }
0x2394   :  { %2024 = vmatpush3.msra.mxu1 %v1855_v63 }
0x2395   :  { %2025 = vmatprep.subr.mxu1 %v2243_v0 }
0x2396   :  { %2026 = vmatpush3.msra.mxu1 %v1854_v55 }
0x2397   :  { %2027 = vmatprep.subr.mxu1 %v2243_v0 }
0x2398   :  { %2028 = vmatpush3.msra.mxu1 %v1853_v56 }
0x2399   :  { %2029 = vmatprep.subr.mxu1 %v2243_v0  ;;  %v2004_v0 = vld [vmem:[%s2881_s11] ss:$0 sm:$0xff] }
0x239a   :  { %2030 = vmatpush3.msra.mxu1 %v1852_v58 }
0x23ff   :  { %v1819_v59 = vpop.permute.xlu1 %1818 }
0x2400   :  { %v1821_v5 = vmul.f32 %v1819_v59, %v1811_v38 }
0x2402   :  { %1823 = vrot.lane.b32.xlu0 %v1821_v5, %s2246_s3 }
0x2474   :  { %v1824_v51 = vpop.permute.xlu0 %1823 }
0x2475   :  { %v1826_v33 = vadd.f32 %v1824_v51, %v1816_v50 }
0x2477   :  { %2166 = vtanh.f32 %v1826_v33 }
0x2484   :  { %v2167_v46 = vpop.eup %2166 }
0x2485   :  { %1829 = vrot.lane.b32.xlu1 %v2167_v46, %s2246_s3  ;;  %s2248_s3 = smov 96  }
0x24f7   :  { %v1830_v61 = vpop.permute.xlu1 %1829 }
0x24f8   :  { %v1832_v44 = vmul.f32 %v1830_v61, %v1812_v48 }
0x24fa   :  { %1839 = vrot.lane.b32.xlu1 %v1832_v44, %s2248_s3  ;;  %v1834_v60 = vrot.slane %v1832_v44, 1 }
0x24fc   :  { %1835 = vrot.lane.b32.xlu0 %v1834_v60, %s2249_s26 }
0x256c   :  { %v1840_v62 = vpop.permute.xlu1 %1839 }
0x256d   :  { %v1843_v6 = vsel %vm114_vm0, %v1840_v62, %v1834_v60 }
0x256e   :  { %v1836_v8 = vpop.permute.xlu0 %1835  ;;  %v1848_v10 = vrot.slane %v1843_v6, 5 }
0x256f   :  { %v1838_v9 = vsel %vm114_vm0, %v1832_v44, %v1836_v8 }
0x2570   :  { %v1845_v28 = vrot.slane %v1838_v9, 6 }
0x2572   :  { %v1851_v52 = vsel %vm1850_vm8, %v1845_v28, %v1848_v10 }
0x2573   :  { %2032 = vmatmul.mubr.msk.f32.vlgmr.msra.gmra.mxu1 %vm249_vm1, %v1851_v52 }
0x2633   :  { %v1936_v22 = vpop.f32.mrf.mxu1 }
0x2634   :  { %v1937_v24 = vadd.f32 %v2004_v0, %v1936_v22 }
0x2635   :  { %v2033_v12 = vpop.f32.mrf.mxu1 }
0x2636   :  { %v1941_v4 = vmin.f32 %v1937_v24, 20.0  ;;  %vm1940_vm11 = vcmp.gt.f32.partialorder %v1937_v24, 20.0 }
0x2638   :  { %v1942_v14 = vmul.f32 1.442695, %v1941_v4 }
0x263a   :  { %2168 = vpow2.f32 %v1942_v14 }
0x2647   :  { %v2169_v15 = vpop.eup %2168 }
0x2648   :  { %v1944_v16 = vadd.f32 1.0, %v2169_v15  ;;  %v1947_v19 = vmul.f32 -0.5, %v2169_v15  ;;  %v1950_v21 = vand.u32 2147483647, %v2169_v15 }
0x264a   :  { %2170 = vlog2.f32 %v1944_v16  ;;  %v1948_v20 = vadd.f32 1.0, %v1947_v19  ;;  %vm1951_vm9 = vcmp.lt.f32.partialorder %v1950_v21, 0.0004427343 }
0x264c   :  { %v1949_v29 = vmul.f32 %v2169_v15, %v1948_v20 }
0x2657   :  { %v2171_v25 = vpop.eup %2170 }
0x2658   :  { %v1946_v27 = vmul.f32 0.6931472, %v2171_v25 }
0x265a   :  { %v1952_v45 = vsel %vm1951_vm9, %v1949_v29, %v1946_v27 }
0x265b   :  { %v1953_v30 = vsel %vm1940_vm11, %v1937_v24, %v1952_v45 }
0x265c   :  { %v1955_v26 = vsel %vm1954_vm10, %v1953_v30, %v1937_v24 }
0x265d   :  { %1957 = vst.msk [vmem:[%s2882_s12] sm:$0x3] %vm1956_vm12, %v1955_v26 }
0x265e   :  { %1962 = vsyncpa [#allocation5], 1 }
0x265f   :  { %1963 = vsyncpa [#allocation7], 1 }

</bundles_post_ra>
